<compile_context>
chip_gen: v7x
topology: tpu7x:2x2x1
jax: 0.10.0
libtpu: 0.0.40
codegen_flags: <defaults>
</compile_context>

<pallas_src>
import functools

import jax
import jax.numpy as jnp
from jax import lax
from jax.experimental import pallas as pl
from jax.experimental.pallas import tpu as pltpu

_EPS = 1e-5
_MXU_DTYPE = jnp.bfloat16   # matmul operand dtype (f32 accumulation, f32 LN math)


# ----------------------------------------------------------------------------
# Fused Pallas kernel: for one batch element, run all three scale branches:
#     t = x + pos ; t = LN_scale(t) ; t = t @ W + b ; t = LN_shared(t)
# ----------------------------------------------------------------------------
def _msenc_kernel(
    # small-scale branch
    x_sm_ref, pos_sm_ref, g_sm_ref, b_sm_ref, w_sm_ref, pb_sm_ref,
    # medium-scale branch
    x_m_ref, pos_m_ref, g_m_ref, b_m_ref, w_m_ref, pb_m_ref,
    # large-scale branch
    x_lg_ref, pos_lg_ref, g_lg_ref, b_lg_ref, w_lg_ref, pb_lg_ref,
    # shared output LayerNorm
    g2_ref, b2_ref,
    # outputs
    o_sm_ref, o_m_ref, o_lg_ref,
    *, eps):
  g2 = g2_ref[...]          # (1, E) — load once, reuse across all three branches
  b2 = b2_ref[...]

  def branch(x_ref, pos_ref, g1_ref, b1_ref, w_ref, pb_ref, o_ref):
    # Inputs are f32; weights arrive pre-cast to bf16 (done once in wrapper).
    t = x_ref[...] + pos_ref[...]                        # (P, E_in) f32

    # LayerNorm over E_in (biased variance, eps inside sqrt — matches torch).
    mu = jnp.mean(t, axis=-1, keepdims=True)
    tc = t - mu
    var = jnp.mean(tc * tc, axis=-1, keepdims=True)
    tn = tc * lax.rsqrt(var + eps)
    tn = tn * g1_ref[...] + b1_ref[...]                  # (1, E_in) broadcast

    # Projection E_in -> E on the MXU: bf16 operands, f32 accumulation.
    y = jnp.dot(tn.astype(_MXU_DTYPE), w_ref[...],
                preferred_element_type=jnp.float32)
    y = y + pb_ref[...]                                  # (1, E) broadcast

    # Shared LayerNorm over E (f32).
    mu2 = jnp.mean(y, axis=-1, keepdims=True)
    yc = y - mu2
    var2 = jnp.mean(yc * yc, axis=-1, keepdims=True)
    yn = yc * lax.rsqrt(var2 + eps)
    o_ref[...] = (yn * g2 + b2).astype(o_ref.dtype)

  branch(x_sm_ref, pos_sm_ref, g_sm_ref, b_sm_ref, w_sm_ref, pb_sm_ref, o_sm_ref)
  branch(x_m_ref, pos_m_ref, g_m_ref, b_m_ref, w_m_ref, pb_m_ref, o_m_ref)
  branch(x_lg_ref, pos_lg_ref, g_lg_ref, b_lg_ref, w_lg_ref, pb_lg_ref, o_lg_ref)


# ----------------------------------------------------------------------------
# Wrapper: one pallas_call for the whole MSEnc "stem"
# ----------------------------------------------------------------------------
def msenc_forward(x, params, dims, *, eps=_EPS):
  b, p, d = x.shape
  assert (p, d) == (dims["sm_patch"], dims["sm_embd"])
  embd = dims["embd"]
  sm_p, sm_e = dims["sm_patch"], dims["sm_embd"]
  m_p, m_e = dims["m_patch"], dims["m_embd"]
  lg_p, lg_e = dims["lg_patch"], dims["lg_embd"]

  # The three token streams are the same bytes viewed at different (P, E)
  # factorizations; XLA reshapes of contiguous arrays are metadata-only.
  x_sm = x
  x_m = x.reshape(b, m_p, m_e)
  x_lg = x.reshape(b, lg_p, lg_e)

  # Weights cast to bf16 once, outside the kernel (they are VMEM-resident
  # across the grid, so this halves their DMA bytes and removes per-step casts).
  w_sm = params["sm_proj_w"].astype(_MXU_DTYPE)
  w_m = params["m_proj_w"].astype(_MXU_DTYPE)
  w_lg = params["lg_proj_w"].astype(_MXU_DTYPE)

  def tok_spec(pp, ee):
    # Leading batch dim squeezed; kernel sees the full (P, E) tile.
    return pl.BlockSpec((None, pp, ee), lambda bi: (bi, 0, 0))

  def resident(shape):
    # Constant index_map -> fetched once, stays VMEM-resident across the grid.
    return pl.BlockSpec(shape, lambda bi: (0, 0))

  in_specs = [
      # small scale
      tok_spec(sm_p, sm_e), resident((sm_p, sm_e)),
      resident((1, sm_e)), resident((1, sm_e)),
      resident((sm_e, embd)), resident((1, embd)),
      # medium scale
      tok_spec(m_p, m_e), resident((m_p, m_e)),
      resident((1, m_e)), resident((1, m_e)),
      resident((m_e, embd)), resident((1, embd)),
      # large scale
      tok_spec(lg_p, lg_e), resident((lg_p, lg_e)),
      resident((1, lg_e)), resident((1, lg_e)),
      resident((lg_e, embd)), resident((1, embd)),
      # shared LayerNorm
      resident((1, embd)), resident((1, embd)),
  ]
  out_specs = (
      pl.BlockSpec((None, sm_p, embd), lambda bi: (bi, 0, 0)),
      pl.BlockSpec((None, m_p, embd), lambda bi: (bi, 0, 0)),
      pl.BlockSpec((None, lg_p, embd), lambda bi: (bi, 0, 0)),
  )
  out_shape = (
      jax.ShapeDtypeStruct((b, sm_p, embd), jnp.float32),
      jax.ShapeDtypeStruct((b, m_p, embd), jnp.float32),
      jax.ShapeDtypeStruct((b, lg_p, embd), jnp.float32),
  )

  kernel = functools.partial(_msenc_kernel, eps=eps)
  sm_tok, m_tok, lg_tok = pl.pallas_call(
      kernel,
      out_shape=out_shape,
      grid_spec=pltpu.PrefetchScalarGridSpec(
          num_scalar_prefetch=0,
          grid=(b,),
          in_specs=in_specs,
          out_specs=out_specs,
      ),
      compiler_params=pltpu.CompilerParams(
          dimension_semantics=("parallel",)),
  )(
      x_sm, params["pos_sm"][0], params["sm_norm_g"], params["sm_norm_b"],
      w_sm, params["sm_proj_b"],
      x_m, params["pos_m"][0], params["m_norm_g"], params["m_norm_b"],
      w_m, params["m_proj_b"],
      x_lg, params["pos_lg"][0], params["lg_norm_g"], params["lg_norm_b"],
      w_lg, params["lg_proj_b"],
      params["norm_g"], params["norm_b"],
  )
  # TODO(synk): MultiScaleEncoder (self.ms) source not provided; return its inputs.
  return sm_tok, m_tok, lg_tok


# ----------------------------------------------------------------------------
# Parameter container
# ----------------------------------------------------------------------------
def init_msenc_params(key, *, sm_patch, sm_embd, m_patch, m_embd,
                      lg_patch, lg_embd, embd):
  ks = jax.random.split(key, 9)
  f32 = jnp.float32

  def lin(kw, kb, e_in, e_out):
    # nn.Linear equivalent kept as (in, out) so the kernel does x @ W + b.
    # (init is normal*0.02, not torch's uniform — irrelevant to the kernel.)
    w = jax.random.normal(kw, (e_in, e_out), f32) * 0.02
    bias = jax.random.normal(kb, (1, e_out), f32) * 0.02
    return w, bias

  sm_w, sm_b = lin(ks[0], ks[3], sm_embd, embd)
  m_w, m_b = lin(ks[1], ks[4], m_embd, embd)
  lg_w, lg_b = lin(ks[2], ks[5], lg_embd, embd)

  params = dict(
      pos_sm=jax.random.normal(ks[6], (1, sm_patch, sm_embd), f32),
      pos_m=jax.random.normal(ks[7], (1, m_patch, m_embd), f32),
      pos_lg=jax.random.normal(ks[8], (1, lg_patch, lg_embd), f32),
      # LayerNorm params (torch default: gamma=1, beta=0), kept 2D (1, E).
      sm_norm_g=jnp.ones((1, sm_embd), f32), sm_norm_b=jnp.zeros((1, sm_embd), f32),
      m_norm_g=jnp.ones((1, m_embd), f32), m_norm_b=jnp.zeros((1, m_embd), f32),
      lg_norm_g=jnp.ones((1, lg_embd), f32), lg_norm_b=jnp.zeros((1, lg_embd), f32),
      norm_g=jnp.ones((1, embd), f32), norm_b=jnp.zeros((1, embd), f32),
      sm_proj_w=sm_w, sm_proj_b=sm_b,
      m_proj_w=m_w, m_proj_b=m_b,
      lg_proj_w=lg_w, lg_proj_b=lg_b,
  )
  dims = dict(sm_patch=sm_patch, sm_embd=sm_embd, m_patch=m_patch,
              m_embd=m_embd, lg_patch=lg_patch, lg_embd=lg_embd, embd=embd)
  return params, dims


# ----------------------------------------------------------------------------
# Pure-JAX reference (mirrors the kernel's bf16 matmul operands / f32 accum)
# ----------------------------------------------------------------------------
def _branch_ref(x, pos, g1, b1, w, bp, g2, b2, eps=_EPS):
  def ln(t, g, bb):
    mu = t.mean(-1, keepdims=True)
    var = ((t - mu) ** 2).mean(-1, keepdims=True)
    return (t - mu) / jnp.sqrt(var + eps) * g + bb
  t = x + pos
  t = ln(t, g1, b1)
  t = jnp.dot(t.astype(_MXU_DTYPE), w.astype(_MXU_DTYPE),
              preferred_element_type=jnp.float32) + bp
  return ln(t, g2, b2)


if __name__ == "__main__":
  # Small shapes consistent with the module: p*d must be equal across scales.
  B = 2
  SM_P, SM_E = 16, 256      # 16 * 256 = 4096
  M_P, M_E = 32, 128        # 32 * 128 = 4096
  LG_P, LG_E = 8, 512       #  8 * 512 = 4096
  EMBD = 128

  key = jax.random.PRNGKey(0)
  k_param, k_x = jax.random.split(key)
  params, dims = init_msenc_params(
      k_param, sm_patch=SM_P, sm_embd=SM_E, m_patch=M_P, m_embd=M_E,
      lg_patch=LG_P, lg_embd=LG_E, embd=EMBD)

  x = jax.random.normal(k_x, (B, SM_P, SM_E), jnp.float32)

  sm, m, lg = jax.block_until_ready(msenc_forward(x, params, dims))

  # Correctness check against a plain-JAX reference (same bf16-operand matmul).
  sm_ref = _branch_ref(x, params["pos_sm"], params["sm_norm_g"],
                       params["sm_norm_b"], params["sm_proj_w"],
                       params["sm_proj_b"], params["norm_g"], params["norm_b"])
  m_ref = _branch_ref(x.reshape(B, M_P, M_E), params["pos_m"],
                      params["m_norm_g"], params["m_norm_b"],
                      params["m_proj_w"], params["m_proj_b"],
                      params["norm_g"], params["norm_b"])
  lg_ref = _branch_ref(x.reshape(B, LG_P, LG_E), params["pos_lg"],
                       params["lg_norm_g"], params["lg_norm_b"],
                       params["lg_proj_w"], params["lg_proj_b"],
                       params["norm_g"], params["norm_b"])

  assert sm.shape == (B, SM_P, EMBD)
  assert m.shape == (B, M_P, EMBD)
  assert lg.shape == (B, LG_P, EMBD)
  assert jnp.allclose(sm, sm_ref, atol=2e-3, rtol=2e-3)
  assert jnp.allclose(m, m_ref, atol=2e-3, rtol=2e-3)
  assert jnp.allclose(lg, lg_ref, atol=2e-3, rtol=2e-3)

  print("KERNEL_OK")
</pallas_src>

<mosaic_0001>
module attributes {stable_mosaic.version = 11 : i64} {
  func.func @_msenc_kernel(%arg0: i32, %arg1: memref<1x16x256xf32, #tpu.memory_space<vmem>>, %arg2: memref<16x256xf32, #tpu.memory_space<vmem>>, %arg3: memref<1x256xf32, #tpu.memory_space<vmem>>, %arg4: memref<1x256xf32, #tpu.memory_space<vmem>>, %arg5: memref<256x128xbf16, #tpu.memory_space<vmem>>, %arg6: memref<1x128xf32, #tpu.memory_space<vmem>>, %arg7: memref<1x32x128xf32, #tpu.memory_space<vmem>>, %arg8: memref<32x128xf32, #tpu.memory_space<vmem>>, %arg9: memref<1x128xf32, #tpu.memory_space<vmem>>, %arg10: memref<1x128xf32, #tpu.memory_space<vmem>>, %arg11: memref<128x128xbf16, #tpu.memory_space<vmem>>, %arg12: memref<1x128xf32, #tpu.memory_space<vmem>>, %arg13: memref<1x8x512xf32, #tpu.memory_space<vmem>>, %arg14: memref<8x512xf32, #tpu.memory_space<vmem>>, %arg15: memref<1x512xf32, #tpu.memory_space<vmem>>, %arg16: memref<1x512xf32, #tpu.memory_space<vmem>>, %arg17: memref<512x128xbf16, #tpu.memory_space<vmem>>, %arg18: memref<1x128xf32, #tpu.memory_space<vmem>>, %arg19: memref<1x128xf32, #tpu.memory_space<vmem>>, %arg20: memref<1x128xf32, #tpu.memory_space<vmem>>, %arg21: memref<1x16x128xf32, #tpu.memory_space<vmem>>, %arg22: memref<1x32x128xf32, #tpu.memory_space<vmem>>, %arg23: memref<1x8x128xf32, #tpu.memory_space<vmem>>) attributes {dimension_semantics = [#tpu.dimension_semantics<parallel>], iteration_bounds = array<i64: 2>, scalar_prefetch = 0 : i64, scratch_operands = 0 : i64, tpu.core_type = #tpu.core_type<tc>, window_params = [{transform_indices = @transform_0, window_bounds = array<i64: 1, 16, 256>}, {pipeline_mode = #tpu.pipeline_mode<synchronous>, transform_indices = @transform_1, window_bounds = array<i64: 16, 256>}, {pipeline_mode = #tpu.pipeline_mode<synchronous>, transform_indices = @transform_2, window_bounds = array<i64: 1, 256>}, {pipeline_mode = #tpu.pipeline_mode<synchronous>, transform_indices = @transform_3, window_bounds = array<i64: 1, 256>}, {pipeline_mode = #tpu.pipeline_mode<synchronous>, transform_indices = @transform_4, window_bounds = array<i64: 256, 128>}, {pipeline_mode = #tpu.pipeline_mode<synchronous>, transform_indices = @transform_5, window_bounds = array<i64: 1, 128>}, {transform_indices = @transform_6, window_bounds = array<i64: 1, 32, 128>}, {pipeline_mode = #tpu.pipeline_mode<synchronous>, transform_indices = @transform_7, window_bounds = array<i64: 32, 128>}, {pipeline_mode = #tpu.pipeline_mode<synchronous>, transform_indices = @transform_8, window_bounds = array<i64: 1, 128>}, {pipeline_mode = #tpu.pipeline_mode<synchronous>, transform_indices = @transform_9, window_bounds = array<i64: 1, 128>}, {pipeline_mode = #tpu.pipeline_mode<synchronous>, transform_indices = @transform_10, window_bounds = array<i64: 128, 128>}, {pipeline_mode = #tpu.pipeline_mode<synchronous>, transform_indices = @transform_11, window_bounds = array<i64: 1, 128>}, {transform_indices = @transform_12, window_bounds = array<i64: 1, 8, 512>}, {pipeline_mode = #tpu.pipeline_mode<synchronous>, transform_indices = @transform_13, window_bounds = array<i64: 8, 512>}, {pipeline_mode = #tpu.pipeline_mode<synchronous>, transform_indices = @transform_14, window_bounds = array<i64: 1, 512>}, {pipeline_mode = #tpu.pipeline_mode<synchronous>, transform_indices = @transform_15, window_bounds = array<i64: 1, 512>}, {pipeline_mode = #tpu.pipeline_mode<synchronous>, transform_indices = @transform_16, window_bounds = array<i64: 512, 128>}, {pipeline_mode = #tpu.pipeline_mode<synchronous>, transform_indices = @transform_17, window_bounds = array<i64: 1, 128>}, {pipeline_mode = #tpu.pipeline_mode<synchronous>, transform_indices = @transform_18, window_bounds = array<i64: 1, 128>}, {pipeline_mode = #tpu.pipeline_mode<synchronous>, transform_indices = @transform_19, window_bounds = array<i64: 1, 128>}, {transform_indices = @transform_20, window_bounds = array<i64: 1, 16, 128>}, {transform_indices = @transform_21, window_bounds = array<i64: 1, 32, 128>}, {transform_indices = @transform_22, window_bounds = array<i64: 1, 8, 128>}]} {
    %c0 = arith.constant 0 : index
    %c0_0 = arith.constant 0 : index
    %0 = vector.load %arg19[%c0, %c0_0] : memref<1x128xf32, #tpu.memory_space<vmem>>, vector<1x128xf32>
    %c0_1 = arith.constant 0 : index
    %c0_2 = arith.constant 0 : index
    %1 = vector.load %arg20[%c0_1, %c0_2] : memref<1x128xf32, #tpu.memory_space<vmem>>, vector<1x128xf32>
    %c0_3 = arith.constant 0 : index
    %c0_4 = arith.constant 0 : index
    %c0_5 = arith.constant 0 : index
    %2 = vector.load %arg1[%c0_3, %c0_4, %c0_5] : memref<1x16x256xf32, #tpu.memory_space<vmem>>, vector<1x16x256xf32>
    %3 = vector.shape_cast %2 : vector<1x16x256xf32> to vector<16x256xf32>
    %c0_6 = arith.constant 0 : index
    %c0_7 = arith.constant 0 : index
    %4 = vector.load %arg2[%c0_6, %c0_7] : memref<16x256xf32, #tpu.memory_space<vmem>>, vector<16x256xf32>
    %5 = arith.addf %3, %4 : vector<16x256xf32>
    %cst = arith.constant dense<0.000000e+00> : vector<16xf32>
    %6 = vector.multi_reduction <add>, %5, %cst [1] : vector<16x256xf32> to vector<16xf32>
    %7 = vector.shape_cast %6 : vector<16xf32> to vector<16x1xf32>
    %cst_8 = arith.constant 2.560000e+02 : f32
    %8 = vector.broadcast %cst_8 : f32 to vector<16x1xf32>
    %9 = arith.divf %7, %8 : vector<16x1xf32>
    %10 = vector.broadcast %9 : vector<16x1xf32> to vector<16x256xf32>
    %11 = arith.subf %5, %10 : vector<16x256xf32>
    %12 = arith.mulf %11, %11 : vector<16x256xf32>
    %cst_9 = arith.constant dense<0.000000e+00> : vector<16xf32>
    %13 = vector.multi_reduction <add>, %12, %cst_9 [1] : vector<16x256xf32> to vector<16xf32>
    %14 = vector.shape_cast %13 : vector<16xf32> to vector<16x1xf32>
    %cst_10 = arith.constant 2.560000e+02 : f32
    %15 = vector.broadcast %cst_10 : f32 to vector<16x1xf32>
    %16 = arith.divf %14, %15 : vector<16x1xf32>
    %cst_11 = arith.constant 9.99999974E-6 : f32
    %17 = vector.broadcast %cst_11 : f32 to vector<16x1xf32>
    %18 = arith.addf %16, %17 : vector<16x1xf32>
    %19 = math.rsqrt %18 : vector<16x1xf32>
    %20 = vector.broadcast %19 : vector<16x1xf32> to vector<16x256xf32>
    %21 = arith.mulf %11, %20 : vector<16x256xf32>
    %c0_12 = arith.constant 0 : index
    %c0_13 = arith.constant 0 : index
    %22 = vector.load %arg3[%c0_12, %c0_13] : memref<1x256xf32, #tpu.memory_space<vmem>>, vector<1x256xf32>
    %23 = vector.broadcast %22 : vector<1x256xf32> to vector<16x256xf32>
    %24 = arith.mulf %21, %23 : vector<16x256xf32>
    %c0_14 = arith.constant 0 : index
    %c0_15 = arith.constant 0 : index
    %25 = vector.load %arg4[%c0_14, %c0_15] : memref<1x256xf32, #tpu.memory_space<vmem>>, vector<1x256xf32>
    %26 = vector.broadcast %25 : vector<1x256xf32> to vector<16x256xf32>
    %27 = arith.addf %24, %26 : vector<16x256xf32>
    %28 = arith.truncf %27 : vector<16x256xf32> to vector<16x256xbf16>
    %c0_16 = arith.constant 0 : index
    %c0_17 = arith.constant 0 : index
    %29 = vector.load %arg5[%c0_16, %c0_17] : memref<256x128xbf16, #tpu.memory_space<vmem>>, vector<256x128xbf16>
    %cst_18 = arith.constant dense<0.000000e+00> : vector<16x128xf32>
    %30 = tpu.matmul %28, %29, %cst_18 {dimension_numbers = #tpu.dot_dimension_numbers<[1], [0], [0], [1], [0, 0, 1, 1], [], []>} : vector<16x256xbf16>, vector<256x128xbf16>, vector<16x128xf32> -> vector<16x128xf32>
    %c0_19 = arith.constant 0 : index
    %c0_20 = arith.constant 0 : index
    %31 = vector.load %arg6[%c0_19, %c0_20] : memref<1x128xf32, #tpu.memory_space<vmem>>, vector<1x128xf32>
    %32 = vector.broadcast %31 : vector<1x128xf32> to vector<16x128xf32>
    %33 = arith.addf %30, %32 : vector<16x128xf32>
    %cst_21 = arith.constant dense<0.000000e+00> : vector<16xf32>
    %34 = vector.multi_reduction <add>, %33, %cst_21 [1] : vector<16x128xf32> to vector<16xf32>
    %35 = vector.shape_cast %34 : vector<16xf32> to vector<16x1xf32>
    %cst_22 = arith.constant 1.280000e+02 : f32
    %36 = vector.broadcast %cst_22 : f32 to vector<16x1xf32>
    %37 = arith.divf %35, %36 : vector<16x1xf32>
    %38 = vector.broadcast %37 : vector<16x1xf32> to vector<16x128xf32>
    %39 = arith.subf %33, %38 : vector<16x128xf32>
    %40 = arith.mulf %39, %39 : vector<16x128xf32>
    %cst_23 = arith.constant dense<0.000000e+00> : vector<16xf32>
    %41 = vector.multi_reduction <add>, %40, %cst_23 [1] : vector<16x128xf32> to vector<16xf32>
    %42 = vector.shape_cast %41 : vector<16xf32> to vector<16x1xf32>
    %cst_24 = arith.constant 1.280000e+02 : f32
    %43 = vector.broadcast %cst_24 : f32 to vector<16x1xf32>
    %44 = arith.divf %42, %43 : vector<16x1xf32>
    %cst_25 = arith.constant 9.99999974E-6 : f32
    %45 = vector.broadcast %cst_25 : f32 to vector<16x1xf32>
    %46 = arith.addf %44, %45 : vector<16x1xf32>
    %47 = math.rsqrt %46 : vector<16x1xf32>
    %48 = vector.broadcast %47 : vector<16x1xf32> to vector<16x128xf32>
    %49 = arith.mulf %39, %48 : vector<16x128xf32>
    %50 = vector.broadcast %0 : vector<1x128xf32> to vector<16x128xf32>
    %51 = arith.mulf %49, %50 : vector<16x128xf32>
    %52 = vector.broadcast %1 : vector<1x128xf32> to vector<16x128xf32>
    %53 = arith.addf %51, %52 : vector<16x128xf32>
    %c0_26 = arith.constant 0 : index
    %c0_27 = arith.constant 0 : index
    %c0_28 = arith.constant 0 : index
    %54 = vector.load %arg21[%c0_26, %c0_27, %c0_28] : memref<1x16x128xf32, #tpu.memory_space<vmem>>, vector<1x16x128xf32>
    %55 = vector.shape_cast %54 : vector<1x16x128xf32> to vector<16x128xf32>
    %56 = vector.shape_cast %53 : vector<16x128xf32> to vector<1x16x128xf32>
    tpu.vector_store %arg21[%c0_26, %c0_27, %c0_28], %56 {strides = array<i32>} : memref<1x16x128xf32, #tpu.memory_space<vmem>>, vector<1x16x128xf32>,
    %c0_29 = arith.constant 0 : index
    %c0_30 = arith.constant 0 : index
    %c0_31 = arith.constant 0 : index
    %57 = vector.load %arg7[%c0_29, %c0_30, %c0_31] : memref<1x32x128xf32, #tpu.memory_space<vmem>>, vector<1x32x128xf32>
    %58 = vector.shape_cast %57 : vector<1x32x128xf32> to vector<32x128xf32>
    %c0_32 = arith.constant 0 : index
    %c0_33 = arith.constant 0 : index
    %59 = vector.load %arg8[%c0_32, %c0_33] : memref<32x128xf32, #tpu.memory_space<vmem>>, vector<32x128xf32>
    %60 = arith.addf %58, %59 : vector<32x128xf32>
    %cst_34 = arith.constant dense<0.000000e+00> : vector<32xf32>
    %61 = vector.multi_reduction <add>, %60, %cst_34 [1] : vector<32x128xf32> to vector<32xf32>
    %62 = vector.shape_cast %61 : vector<32xf32> to vector<32x1xf32>
    %cst_35 = arith.constant 1.280000e+02 : f32
    %63 = vector.broadcast %cst_35 : f32 to vector<32x1xf32>
    %64 = arith.divf %62, %63 : vector<32x1xf32>
    %65 = vector.broadcast %64 : vector<32x1xf32> to vector<32x128xf32>
    %66 = arith.subf %60, %65 : vector<32x128xf32>
    %67 = arith.mulf %66, %66 : vector<32x128xf32>
    %cst_36 = arith.constant dense<0.000000e+00> : vector<32xf32>
    %68 = vector.multi_reduction <add>, %67, %cst_36 [1] : vector<32x128xf32> to vector<32xf32>
    %69 = vector.shape_cast %68 : vector<32xf32> to vector<32x1xf32>
    %cst_37 = arith.constant 1.280000e+02 : f32
    %70 = vector.broadcast %cst_37 : f32 to vector<32x1xf32>
    %71 = arith.divf %69, %70 : vector<32x1xf32>
    %cst_38 = arith.constant 9.99999974E-6 : f32
    %72 = vector.broadcast %cst_38 : f32 to vector<32x1xf32>
    %73 = arith.addf %71, %72 : vector<32x1xf32>
    %74 = math.rsqrt %73 : vector<32x1xf32>
    %75 = vector.broadcast %74 : vector<32x1xf32> to vector<32x128xf32>
    %76 = arith.mulf %66, %75 : vector<32x128xf32>
    %c0_39 = arith.constant 0 : index
    %c0_40 = arith.constant 0 : index
    %77 = vector.load %arg9[%c0_39, %c0_40] : memref<1x128xf32, #tpu.memory_space<vmem>>, vector<1x128xf32>
    %78 = vector.broadcast %77 : vector<1x128xf32> to vector<32x128xf32>
    %79 = arith.mulf %76, %78 : vector<32x128xf32>
    %c0_41 = arith.constant 0 : index
    %c0_42 = arith.constant 0 : index
    %80 = vector.load %arg10[%c0_41, %c0_42] : memref<1x128xf32, #tpu.memory_space<vmem>>, vector<1x128xf32>
    %81 = vector.broadcast %80 : vector<1x128xf32> to vector<32x128xf32>
    %82 = arith.addf %79, %81 : vector<32x128xf32>
    %83 = arith.truncf %82 : vector<32x128xf32> to vector<32x128xbf16>
    %c0_43 = arith.constant 0 : index
    %c0_44 = arith.constant 0 : index
    %84 = vector.load %arg11[%c0_43, %c0_44] : memref<128x128xbf16, #tpu.memory_space<vmem>>, vector<128x128xbf16>
    %cst_45 = arith.constant dense<0.000000e+00> : vector<32x128xf32>
    %85 = tpu.matmul %83, %84, %cst_45 {dimension_numbers = #tpu.dot_dimension_numbers<[1], [0], [0], [1], [0, 0, 1, 1], [], []>} : vector<32x128xbf16>, vector<128x128xbf16>, vector<32x128xf32> -> vector<32x128xf32>
    %c0_46 = arith.constant 0 : index
    %c0_47 = arith.constant 0 : index
    %86 = vector.load %arg12[%c0_46, %c0_47] : memref<1x128xf32, #tpu.memory_space<vmem>>, vector<1x128xf32>
    %87 = vector.broadcast %86 : vector<1x128xf32> to vector<32x128xf32>
    %88 = arith.addf %85, %87 : vector<32x128xf32>
    %cst_48 = arith.constant dense<0.000000e+00> : vector<32xf32>
    %89 = vector.multi_reduction <add>, %88, %cst_48 [1] : vector<32x128xf32> to vector<32xf32>
    %90 = vector.shape_cast %89 : vector<32xf32> to vector<32x1xf32>
    %cst_49 = arith.constant 1.280000e+02 : f32
    %91 = vector.broadcast %cst_49 : f32 to vector<32x1xf32>
    %92 = arith.divf %90, %91 : vector<32x1xf32>
    %93 = vector.broadcast %92 : vector<32x1xf32> to vector<32x128xf32>
    %94 = arith.subf %88, %93 : vector<32x128xf32>
    %95 = arith.mulf %94, %94 : vector<32x128xf32>
    %cst_50 = arith.constant dense<0.000000e+00> : vector<32xf32>
    %96 = vector.multi_reduction <add>, %95, %cst_50 [1] : vector<32x128xf32> to vector<32xf32>
    %97 = vector.shape_cast %96 : vector<32xf32> to vector<32x1xf32>
    %cst_51 = arith.constant 1.280000e+02 : f32
    %98 = vector.broadcast %cst_51 : f32 to vector<32x1xf32>
    %99 = arith.divf %97, %98 : vector<32x1xf32>
    %cst_52 = arith.constant 9.99999974E-6 : f32
    %100 = vector.broadcast %cst_52 : f32 to vector<32x1xf32>
    %101 = arith.addf %99, %100 : vector<32x1xf32>
    %102 = math.rsqrt %101 : vector<32x1xf32>
    %103 = vector.broadcast %102 : vector<32x1xf32> to vector<32x128xf32>
    %104 = arith.mulf %94, %103 : vector<32x128xf32>
    %105 = vector.broadcast %0 : vector<1x128xf32> to vector<32x128xf32>
    %106 = arith.mulf %104, %105 : vector<32x128xf32>
    %107 = vector.broadcast %1 : vector<1x128xf32> to vector<32x128xf32>
    %108 = arith.addf %106, %107 : vector<32x128xf32>
    %c0_53 = arith.constant 0 : index
    %c0_54 = arith.constant 0 : index
    %c0_55 = arith.constant 0 : index
    %109 = vector.load %arg22[%c0_53, %c0_54, %c0_55] : memref<1x32x128xf32, #tpu.memory_space<vmem>>, vector<1x32x128xf32>
    %110 = vector.shape_cast %109 : vector<1x32x128xf32> to vector<32x128xf32>
    %111 = vector.shape_cast %108 : vector<32x128xf32> to vector<1x32x128xf32>
    tpu.vector_store %arg22[%c0_53, %c0_54, %c0_55], %111 {strides = array<i32>} : memref<1x32x128xf32, #tpu.memory_space<vmem>>, vector<1x32x128xf32>,
    %c0_56 = arith.constant 0 : index
    %c0_57 = arith.constant 0 : index
    %c0_58 = arith.constant 0 : index
    %112 = vector.load %arg13[%c0_56, %c0_57, %c0_58] : memref<1x8x512xf32, #tpu.memory_space<vmem>>, vector<1x8x512xf32>
    %113 = vector.shape_cast %112 : vector<1x8x512xf32> to vector<8x512xf32>
    %c0_59 = arith.constant 0 : index
    %c0_60 = arith.constant 0 : index
    %114 = vector.load %arg14[%c0_59, %c0_60] : memref<8x512xf32, #tpu.memory_space<vmem>>, vector<8x512xf32>
    %115 = arith.addf %113, %114 : vector<8x512xf32>
    %cst_61 = arith.constant dense<0.000000e+00> : vector<8xf32>
    %116 = vector.multi_reduction <add>, %115, %cst_61 [1] : vector<8x512xf32> to vector<8xf32>
    %117 = vector.shape_cast %116 : vector<8xf32> to vector<8x1xf32>
    %cst_62 = arith.constant 5.120000e+02 : f32
    %118 = vector.broadcast %cst_62 : f32 to vector<8x1xf32>
    %119 = arith.divf %117, %118 : vector<8x1xf32>
    %120 = vector.broadcast %119 : vector<8x1xf32> to vector<8x512xf32>
    %121 = arith.subf %115, %120 : vector<8x512xf32>
    %122 = arith.mulf %121, %121 : vector<8x512xf32>
    %cst_63 = arith.constant dense<0.000000e+00> : vector<8xf32>
    %123 = vector.multi_reduction <add>, %122, %cst_63 [1] : vector<8x512xf32> to vector<8xf32>
    %124 = vector.shape_cast %123 : vector<8xf32> to vector<8x1xf32>
    %cst_64 = arith.constant 5.120000e+02 : f32
    %125 = vector.broadcast %cst_64 : f32 to vector<8x1xf32>
    %126 = arith.divf %124, %125 : vector<8x1xf32>
    %cst_65 = arith.constant 9.99999974E-6 : f32
    %127 = vector.broadcast %cst_65 : f32 to vector<8x1xf32>
    %128 = arith.addf %126, %127 : vector<8x1xf32>
    %129 = math.rsqrt %128 : vector<8x1xf32>
    %130 = vector.broadcast %129 : vector<8x1xf32> to vector<8x512xf32>
    %131 = arith.mulf %121, %130 : vector<8x512xf32>
    %c0_66 = arith.constant 0 : index
    %c0_67 = arith.constant 0 : index
    %132 = vector.load %arg15[%c0_66, %c0_67] : memref<1x512xf32, #tpu.memory_space<vmem>>, vector<1x512xf32>
    %133 = vector.broadcast %132 : vector<1x512xf32> to vector<8x512xf32>
    %134 = arith.mulf %131, %133 : vector<8x512xf32>
    %c0_68 = arith.constant 0 : index
    %c0_69 = arith.constant 0 : index
    %135 = vector.load %arg16[%c0_68, %c0_69] : memref<1x512xf32, #tpu.memory_space<vmem>>, vector<1x512xf32>
    %136 = vector.broadcast %135 : vector<1x512xf32> to vector<8x512xf32>
    %137 = arith.addf %134, %136 : vector<8x512xf32>
    %138 = arith.truncf %137 : vector<8x512xf32> to vector<8x512xbf16>
    %c0_70 = arith.constant 0 : index
    %c0_71 = arith.constant 0 : index
    %139 = vector.load %arg17[%c0_70, %c0_71] : memref<512x128xbf16, #tpu.memory_space<vmem>>, vector<512x128xbf16>
    %cst_72 = arith.constant dense<0.000000e+00> : vector<8x128xf32>
    %140 = tpu.matmul %138, %139, %cst_72 {dimension_numbers = #tpu.dot_dimension_numbers<[1], [0], [0], [1], [0, 0, 1, 1], [], []>} : vector<8x512xbf16>, vector<512x128xbf16>, vector<8x128xf32> -> vector<8x128xf32>
    %c0_73 = arith.constant 0 : index
    %c0_74 = arith.constant 0 : index
    %141 = vector.load %arg18[%c0_73, %c0_74] : memref<1x128xf32, #tpu.memory_space<vmem>>, vector<1x128xf32>
    %142 = vector.broadcast %141 : vector<1x128xf32> to vector<8x128xf32>
    %143 = arith.addf %140, %142 : vector<8x128xf32>
    %cst_75 = arith.constant dense<0.000000e+00> : vector<8xf32>
    %144 = vector.multi_reduction <add>, %143, %cst_75 [1] : vector<8x128xf32> to vector<8xf32>
    %145 = vector.shape_cast %144 : vector<8xf32> to vector<8x1xf32>
    %cst_76 = arith.constant 1.280000e+02 : f32
    %146 = vector.broadcast %cst_76 : f32 to vector<8x1xf32>
    %147 = arith.divf %145, %146 : vector<8x1xf32>
    %148 = vector.broadcast %147 : vector<8x1xf32> to vector<8x128xf32>
    %149 = arith.subf %143, %148 : vector<8x128xf32>
    %150 = arith.mulf %149, %149 : vector<8x128xf32>
    %cst_77 = arith.constant dense<0.000000e+00> : vector<8xf32>
    %151 = vector.multi_reduction <add>, %150, %cst_77 [1] : vector<8x128xf32> to vector<8xf32>
    %152 = vector.shape_cast %151 : vector<8xf32> to vector<8x1xf32>
    %cst_78 = arith.constant 1.280000e+02 : f32
    %153 = vector.broadcast %cst_78 : f32 to vector<8x1xf32>
    %154 = arith.divf %152, %153 : vector<8x1xf32>
    %cst_79 = arith.constant 9.99999974E-6 : f32
    %155 = vector.broadcast %cst_79 : f32 to vector<8x1xf32>
    %156 = arith.addf %154, %155 : vector<8x1xf32>
    %157 = math.rsqrt %156 : vector<8x1xf32>
    %158 = vector.broadcast %157 : vector<8x1xf32> to vector<8x128xf32>
    %159 = arith.mulf %149, %158 : vector<8x128xf32>
    %160 = vector.broadcast %0 : vector<1x128xf32> to vector<8x128xf32>
    %161 = arith.mulf %159, %160 : vector<8x128xf32>
    %162 = vector.broadcast %1 : vector<1x128xf32> to vector<8x128xf32>
    %163 = arith.addf %161, %162 : vector<8x128xf32>
    %c0_80 = arith.constant 0 : index
    %c0_81 = arith.constant 0 : index
    %c0_82 = arith.constant 0 : index
    %164 = vector.load %arg23[%c0_80, %c0_81, %c0_82] : memref<1x8x128xf32, #tpu.memory_space<vmem>>, vector<1x8x128xf32>
    %165 = vector.shape_cast %164 : vector<1x8x128xf32> to vector<8x128xf32>
    %166 = vector.shape_cast %163 : vector<8x128xf32> to vector<1x8x128xf32>
    tpu.vector_store %arg23[%c0_80, %c0_81, %c0_82], %166 {strides = array<i32>} : memref<1x8x128xf32, #tpu.memory_space<vmem>>, vector<1x8x128xf32>,
    return
  }
  func.func @transform_0(%arg0: i32) -> (i32, i32, i32) {
    %c0_i32 = arith.constant 0 : i32
    %c0_i32_0 = arith.constant 0 : i32
    %c0_i32_1 = arith.constant 0 : i32
    return %arg0, %c0_i32, %c0_i32_0 : i32, i32, i32
  }
  func.func @transform_1(%arg0: i32) -> (i32, i32) {
    %c0_i32 = arith.constant 0 : i32
    %c0_i32_0 = arith.constant 0 : i32
    %c0_i32_1 = arith.constant 0 : i32
    return %c0_i32, %c0_i32_0 : i32, i32
  }
  func.func @transform_2(%arg0: i32) -> (i32, i32) {
    %c0_i32 = arith.constant 0 : i32
    %c0_i32_0 = arith.constant 0 : i32
    %c0_i32_1 = arith.constant 0 : i32
    return %c0_i32, %c0_i32_0 : i32, i32
  }
  func.func @transform_3(%arg0: i32) -> (i32, i32) {
    %c0_i32 = arith.constant 0 : i32
    %c0_i32_0 = arith.constant 0 : i32
    %c0_i32_1 = arith.constant 0 : i32
    return %c0_i32, %c0_i32_0 : i32, i32
  }
  func.func @transform_4(%arg0: i32) -> (i32, i32) {
    %c0_i32 = arith.constant 0 : i32
    %c0_i32_0 = arith.constant 0 : i32
    %c0_i32_1 = arith.constant 0 : i32
    return %c0_i32, %c0_i32_0 : i32, i32
  }
  func.func @transform_5(%arg0: i32) -> (i32, i32) {
    %c0_i32 = arith.constant 0 : i32
    %c0_i32_0 = arith.constant 0 : i32
    %c0_i32_1 = arith.constant 0 : i32
    return %c0_i32, %c0_i32_0 : i32, i32
  }
  func.func @transform_6(%arg0: i32) -> (i32, i32, i32) {
    %c0_i32 = arith.constant 0 : i32
    %c0_i32_0 = arith.constant 0 : i32
    %c0_i32_1 = arith.constant 0 : i32
    return %arg0, %c0_i32, %c0_i32_0 : i32, i32, i32
  }
  func.func @transform_7(%arg0: i32) -> (i32, i32) {
    %c0_i32 = arith.constant 0 : i32
    %c0_i32_0 = arith.constant 0 : i32
    %c0_i32_1 = arith.constant 0 : i32
    return %c0_i32, %c0_i32_0 : i32, i32
  }
  func.func @transform_8(%arg0: i32) -> (i32, i32) {
    %c0_i32 = arith.constant 0 : i32
    %c0_i32_0 = arith.constant 0 : i32
    %c0_i32_1 = arith.constant 0 : i32
    return %c0_i32, %c0_i32_0 : i32, i32
  }
  func.func @transform_9(%arg0: i32) -> (i32, i32) {
    %c0_i32 = arith.constant 0 : i32
    %c0_i32_0 = arith.constant 0 : i32
    %c0_i32_1 = arith.constant 0 : i32
    return %c0_i32, %c0_i32_0 : i32, i32
  }
  func.func @transform_10(%arg0: i32) -> (i32, i32) {
    %c0_i32 = arith.constant 0 : i32
    %c0_i32_0 = arith.constant 0 : i32
    %c0_i32_1 = arith.constant 0 : i32
    return %c0_i32, %c0_i32_0 : i32, i32
  }
  func.func @transform_11(%arg0: i32) -> (i32, i32) {
    %c0_i32 = arith.constant 0 : i32
    %c0_i32_0 = arith.constant 0 : i32
    %c0_i32_1 = arith.constant 0 : i32
    return %c0_i32, %c0_i32_0 : i32, i32
  }
  func.func @transform_12(%arg0: i32) -> (i32, i32, i32) {
    %c0_i32 = arith.constant 0 : i32
    %c0_i32_0 = arith.constant 0 : i32
    %c0_i32_1 = arith.constant 0 : i32
    return %arg0, %c0_i32, %c0_i32_0 : i32, i32, i32
  }
  func.func @transform_13(%arg0: i32) -> (i32, i32) {
    %c0_i32 = arith.constant 0 : i32
    %c0_i32_0 = arith.constant 0 : i32
    %c0_i32_1 = arith.constant 0 : i32
    return %c0_i32, %c0_i32_0 : i32, i32
  }
  func.func @transform_14(%arg0: i32) -> (i32, i32) {
    %c0_i32 = arith.constant 0 : i32
    %c0_i32_0 = arith.constant 0 : i32
    %c0_i32_1 = arith.constant 0 : i32
    return %c0_i32, %c0_i32_0 : i32, i32
  }
  func.func @transform_15(%arg0: i32) -> (i32, i32) {
    %c0_i32 = arith.constant 0 : i32
    %c0_i32_0 = arith.constant 0 : i32
    %c0_i32_1 = arith.constant 0 : i32
    return %c0_i32, %c0_i32_0 : i32, i32
  }
  func.func @transform_16(%arg0: i32) -> (i32, i32) {
    %c0_i32 = arith.constant 0 : i32
    %c0_i32_0 = arith.constant 0 : i32
    %c0_i32_1 = arith.constant 0 : i32
    return %c0_i32, %c0_i32_0 : i32, i32
  }
  func.func @transform_17(%arg0: i32) -> (i32, i32) {
    %c0_i32 = arith.constant 0 : i32
    %c0_i32_0 = arith.constant 0 : i32
    %c0_i32_1 = arith.constant 0 : i32
    return %c0_i32, %c0_i32_0 : i32, i32
  }
  func.func @transform_18(%arg0: i32) -> (i32, i32) {
    %c0_i32 = arith.constant 0 : i32
    %c0_i32_0 = arith.constant 0 : i32
    %c0_i32_1 = arith.constant 0 : i32
    return %c0_i32, %c0_i32_0 : i32, i32
  }
  func.func @transform_19(%arg0: i32) -> (i32, i32) {
    %c0_i32 = arith.constant 0 : i32
    %c0_i32_0 = arith.constant 0 : i32
    %c0_i32_1 = arith.constant 0 : i32
    return %c0_i32, %c0_i32_0 : i32, i32
  }
  func.func @transform_20(%arg0: i32) -> (i32, i32, i32) {
    %c0_i32 = arith.constant 0 : i32
    %c0_i32_0 = arith.constant 0 : i32
    %c0_i32_1 = arith.constant 0 : i32
    return %arg0, %c0_i32, %c0_i32_0 : i32, i32, i32
  }
  func.func @transform_21(%arg0: i32) -> (i32, i32, i32) {
    %c0_i32 = arith.constant 0 : i32
    %c0_i32_0 = arith.constant 0 : i32
    %c0_i32_1 = arith.constant 0 : i32
    return %arg0, %c0_i32, %c0_i32_0 : i32, i32, i32
  }
  func.func @transform_22(%arg0: i32) -> (i32, i32, i32) {
    %c0_i32 = arith.constant 0 : i32
    %c0_i32_0 = arith.constant 0 : i32
    %c0_i32_1 = arith.constant 0 : i32
    return %arg0, %c0_i32, %c0_i32_0 : i32, i32, i32
  }
}

</mosaic_0001>

<bundles_post_ra>
// kernel: tpu_custom_call.1
= control target key start
LH: loop header
LB: loop body
LE: loop exit
PB: predicated region body
PF: predicated region fallthrough
CT: control target
= control target key end

     0   :  { %s3849_s0 = inlined_call_operand.hbm [shape: f32[2,16,256], index: 0, kind: input, shape index: {}]   ;;  %s3850_s1 = inlined_call_operand.hbm [shape: f32[16,256], index: 1, kind: input, shape index: {}]   ;;  %s3851_s2 = inlined_call_operand.vmem [shape: f32[1,256], index: 2, kind: input, shape index: {}]   ;;  %s3852_s3 = inlined_call_operand.hbm [shape: f32[1,256], index: 3, kind: input, shape index: {}]   ;;  %s3853_s4 = inlined_call_operand.hbm [shape: bf16[256,128], index: 4, kind: input, shape index: {}]   ;;  %s3854_s5 = inlined_call_operand.vmem [shape: f32[1,128], index: 5, kind: input, shape index: {}]   ;;  %s3855_s6 = inlined_call_operand.hbm [shape: f32[2,32,128], index: 6, kind: input, shape index: {}]   ;;  %s3856_s7 = inlined_call_operand.hbm [shape: f32[32,128], index: 7, kind: input, shape index: {}]   ;;  %s3857_s8 = inlined_call_operand.vmem [shape: f32[1,128], index: 8, kind: input, shape index: {}]   ;;  %s3858_s9 = inlined_call_operand.vmem [shape: f32[1,128], index: 9, kind: input, shape index: {}]   ;;  %s3859_s10 = inlined_call_operand.hbm [shape: bf16[128,128], index: 10, kind: input, shape index: {}]   ;;  %s3860_s11 = inlined_call_operand.vmem [shape: f32[1,128], index: 11, kind: input, shape index: {}]   ;;  %s3861_s12 = inlined_call_operand.hbm [shape: f32[2,8,512], index: 12, kind: input, shape index: {}]   ;;  %s3862_s13 = inlined_call_operand.vmem [shape: f32[8,512], index: 13, kind: input, shape index: {}]   ;;  %s3863_s14 = inlined_call_operand.vmem [shape: f32[1,512], index: 14, kind: input, shape index: {}]   ;;  %s3864_s15 = inlined_call_operand.vmem [shape: f32[1,512], index: 15, kind: input, shape index: {}]   ;;  %s3865_s16 = inlined_call_operand.hbm [shape: bf16[512,128], index: 16, kind: input, shape index: {}]   ;;  %s3866_s17 = inlined_call_operand.vmem [shape: f32[1,128], index: 17, kind: input, shape index: {}]   ;;  %s3867_s18 = inlined_call_operand.vmem [shape: f32[1,128], index: 18, kind: input, shape index: {}]   ;;  %s3868_s19 = inlined_call_operand.vmem [shape: f32[1,128], index: 19, kind: input, shape index: {}]   ;;  %s3869_s20 = inlined_call_operand.hbm [shape: f32[2,16,128], index: 20, kind: output, shape index: {0}]   ;;  %s3870_s21 = inlined_call_operand.hbm [shape: f32[2,32,128], index: 21, kind: output, shape index: {1}]   ;;  %s3871_s22 = inlined_call_operand.hbm [shape: f32[2,8,128], index: 22, kind: output, shape index: {2}]  }
   0x1   :  { %3909 = sst [smem:[#allocation36_spill]] %s3849_s0 }
   0x2   :  { %3910 = sst [smem:[#allocation37_spill]] %s3850_s1 }
   0x3   :  { %3911 = sst [smem:[#allocation38_spill]] %s3851_s2 }
   0x4   :  { %3912 = sst [smem:[#allocation39_spill]] %s3852_s3 }
   0x5   :  { %3913 = sst [smem:[#allocation40_spill]] %s3853_s4 }
   0x6   :  { %3914 = sst [smem:[#allocation41_spill]] %s3854_s5 }
   0x7   :  { %3915 = sst [smem:[#allocation42_spill]] %s3855_s6 }
   0x8   :  { %3916 = sst [smem:[#allocation43_spill]] %s3857_s8 }
   0x9   :  { %3917 = sst [smem:[#allocation44_spill]] %s3858_s9 }
   0xa   :  { %3918 = sst [smem:[#allocation45_spill]] %s3860_s11 }
   0xb   :  { %3919 = sst [smem:[#allocation46_spill]] %s3862_s13 }
   0xc   :  { %3920 = sst [smem:[#allocation47_spill]] %s3863_s14 }
   0xd   :  { %3921 = sst [smem:[#allocation48_spill]] %s3864_s15 }
   0xe   :  { %3922 = sst [smem:[#allocation49_spill]] %s3865_s16 }
   0xf   :  { %3923 = sst [smem:[#allocation50_spill]] %s3866_s17 }
  0x10   :  { %3924 = sst [smem:[#allocation51_spill]] %s3867_s18 }
  0x11   :  { %3925 = sst [smem:[#allocation52_spill]] %s3868_s19 }
  0x12   :  { %3926 = sst [smem:[#allocation53_spill]] %s3869_s20 }
  0x13   :  { %3927 = sst [smem:[#allocation54_spill]] %s3870_s21 }
  0x14   :  { %3928 = sst [smem:[#allocation55_spill]] %s3871_s22 }
  0x15   :  { %28 = vsyncpa [#allocation3], 0 }
  0x16   :  { %30 = vsyncpa [#allocation3 + $0x1], 0 }
  0x17   :  { %31 = vsyncpa [#allocation6], 0 }
  0x18   :  { %32 = vsyncpa [#allocation9], 0 }
  0x19   :  { %33 = vsyncpa [#allocation14], 0 }
  0x1a   :  { %35 = vsyncpa [#allocation14 + $0x1], 0 }
  0x1b   :  { %36 = vsyncpa [#allocation4], 0 }
  0x1c   :  { %38 = vsyncpa [#allocation4 + $0x1], 0 }
  0x1d   :  { %39 = vsyncpa [#allocation18], 0 }
  0x1e   :  { %41 = vsyncpa [#allocation18 + $0x1], 0  ;;  %s3145_s3 = smov 0   ;;  %s3147_s28 = smov 0  }
  0x1f   :  { %s3149_s29 = smov 0   ;;  %s3151_s30 = smov 0  }
  0x20 LB: > { %3929 = sst [smem:[#allocation30_spill]] %s2996_s3  ;;  %s3010_s4 = smov [#allocation5]   ;;  %s3008_s30 = sphi %s3151_s30, %s3995_s30   ;;  %s3004_s29 = sphi %s3149_s29, %s4000_s29   ;;  %s3000_s28 = sphi %s3147_s28, %s3999_s28   ;;  %s2996_s3 = sphi %s3145_s3, %s3998_s3  }
  0x21   : > { %3930 = sst [smem:[#allocation31_spill]] %s3004_s29  ;;  %s577_s0 = sshll.u32 %s3010_s4, 4  ;;  %s3171_s0 = int_to_ptr.vmem [resolvable:$true] %s577_s0 }
  0x22   : > { %s3166_s23 = sadd.s32 4294967295, %s3008_s30   ;;  %p2173_p0 = scmp.ge.s32.totalorder %s3008_s30, 1 }
  0x23   : > { %p3883_p1 = scmp.eq.s32.totalorder %s3166_s23, 0  ;;  %p565_p2 = scmp.lt.s32.totalorder %s3008_s30, 3 }
  0x24   : > { %s3011_s5 = smov [#allocation7]   ;;  %s3012_s25 = smov [#allocation8]  }
  0x25   : > { %p3173_p3 = pnand %p2173_p0, %p565_p2  ;;  %s594_s24 = sshll.u32 %s3011_s5, 4  ;;  %s3186_s24 = int_to_ptr.vmem [resolvable:$true] %s594_s24 }
  0x26   : > { %s604_s26 = sshll.u32 %s3012_s25, 4  ;;  %s3933_s4 = sld [smem:[#allocation37_spill]]  ;;  %s3188_s26 = int_to_ptr.vmem [resolvable:$true] %s604_s26 }
  0x27   : > { %s3931_s1 = scalar_select %p3173_p3, 1, 0 }
  0x28   : > { %p2413_p5 = pneg %p3173_p3 }
  0x2a   : > { %p3182_p6 = pnand %p2413_p5, %p3883_p1 }
  0x2c   : > { %s3932_s6 = scalar_select %p3182_p6, 1, 0 }
  0x2d   : > { %s2596_s22 = scalar_lea.hbm %s3933_s4, 512  ;;  %p3198_p8 = pneg %p3182_p6 }
  0x2e   : > { %p2597_p7 = scmp.ne.s32.totalorder %s3933_s4, %s2596_s22  ;;  %p2603_p11 = scmp.lt.u32.totalorder %s2596_s22, %s3933_s4 }
  0x2f   : > { %s3934_s5 = scalar_select %p3198_p8, 1, 0 }
  0x30   : > { %p2599_p9 = pnand %p3198_p8, %p2597_p7 }
  0x32   : > { %p2600_p10 = pneg %p2599_p9 }
  0x34   : > { %p2605_p12 = pnand %p2603_p11, %p2600_p10 }
  0x36   : > { %2608 = shalt.err (!%p2605_p12)
}
  0x37   : > { %s2609_s20 = scalar_lea.vmem %s3171_s0, 512  ;;  %p2617_p5 = scmp.lt.s32.totalorder %s3171_s0, %s3171_s0 }
  0x38   : > { %p2610_p13 = scmp.ne.s32.totalorder %s3171_s0, %s2609_s20  ;;  %p2618_p4 = scmp.lt.s32.totalorder %s2609_s20, %s2609_s20 }
  0x3a   : > { %p2612_p0 = pnand %p2610_p13, %p3198_p8  ;;  %p2619_p7 = por %p2618_p4, %p2617_p5 }
  0x3c   : > { %p2613_p2 = pneg %p2612_p0 }
  0x3e   : > { %p2620_p9 = pnand %p2619_p7, %p2613_p2 }
  0x40   : > { %2623 = shalt.err (!%p2620_p9)
}
  0x41   : > { %s3880_s21 = smov 256   ;;  %s3881_s19 = smov 16  }
  0x42   : > { %2416 = dma.hbm_to_vmem [thread:$0]  (!%p3182_p6), %s3933_s4, 512, %s3171_s0, [#allocation6], %s3880_s21, %s3880_s21, %s3881_s19  }
  0x43   : > { %s3935_s18 = sld [smem:[#allocation39_spill]] }
  0x49   : > { %s2624_s20 = scalar_lea.hbm %s3935_s18, 32 }
  0x4a   : > { %p2625_p4 = scmp.ne.s32.totalorder %s3935_s18, %s2624_s20  ;;  %p2631_p12 = scmp.lt.u32.totalorder %s2624_s20, %s3935_s18 }
  0x4c   : > { %p2627_p10 = pnand %p2625_p4, %p3198_p8 }
  0x4e   : > { %p2628_p11 = pneg %p2627_p10 }
  0x50   : > { %p2633_p13 = pnand %p2631_p12, %p2628_p11 }
  0x52   : > { %2636 = shalt.err (!%p2633_p13)
}
  0x53   : > { %s2637_s0 = scalar_lea.vmem %s3186_s24, 32  ;;  %p2645_p7 = scmp.lt.s32.totalorder %s3186_s24, %s3186_s24 }
  0x54   : > { %p2638_p0 = scmp.ne.s32.totalorder %s3186_s24, %s2637_s0  ;;  %p2646_p9 = scmp.lt.s32.totalorder %s2637_s0, %s2637_s0 }
  0x56   : > { %p2640_p2 = pnand %p2638_p0, %p3198_p8  ;;  %p2647_p4 = por %p2646_p9, %p2645_p7 }
  0x58   : > { %p2641_p5 = pneg %p2640_p2 }
  0x5a   : > { %p2648_p10 = pnand %p2647_p4, %p2641_p5 }
  0x5c   : > { %2651 = shalt.err (!%p2648_p10)
}
  0x5d   : > { %2419 = dma.hbm_to_vmem [thread:$0]  (!%p3182_p6), %s3935_s18, 32, %s3186_s24, [#allocation6]  }
  0x5e   : > { %s3936_s22 = sld [smem:[#allocation40_spill]] }
  0x64   : > { %s2652_s2 = scalar_lea.hbm %s3936_s22, 2048 }
  0x65   : > { %p2653_p11 = scmp.ne.s32.totalorder %s3936_s22, %s2652_s2  ;;  %p2659_p0 = scmp.lt.u32.totalorder %s2652_s2, %s3936_s22 }
  0x67   : > { %p2655_p12 = pnand %p2653_p11, %p3198_p8 }
  0x69   : > { %p2656_p13 = pneg %p2655_p12 }
  0x6b   : > { %p2661_p2 = pnand %p2659_p0, %p2656_p13 }
  0x6d   : > { %2664 = shalt.err (!%p2661_p2)
}
  0x6e   : > { %s2665_s24 = scalar_lea.vmem %s3188_s26, 2048  ;;  %p2673_p4 = scmp.lt.s32.totalorder %s3188_s26, %s3188_s26 }
  0x6f   : > { %p2666_p5 = scmp.ne.s32.totalorder %s3188_s26, %s2665_s24  ;;  %p2674_p10 = scmp.lt.s32.totalorder %s2665_s24, %s2665_s24 }
  0x71   : > { %p2668_p7 = pnand %p2666_p5, %p3198_p8  ;;  %p2675_p11 = por %p2674_p10, %p2673_p4 }
  0x73   : > { %p2669_p9 = pneg %p2668_p7 }
  0x75   : > { %p2676_p12 = pnand %p2675_p11, %p2669_p9 }
  0x77   : > { %2679 = shalt.err (!%p2676_p12)
}
  0x78   : > { %s3885_s11 = smov 64   ;;  %s3887_s14 = smov 4  }
  0x79   : > { %2422 = dma.hbm_to_vmem [thread:$0]  (!%p3182_p6), %s3936_s22, 2048, %s3188_s26, [#allocation9], %s3885_s11, %s3885_s11, %s3887_s14  }
  0x7a   : > { %s3017_s2 = smov [#allocation15]   ;;  %s3937_s16 = sld [smem:[#allocation49_spill]] }
  0x7b   : > { %s664_s27 = sshll.u32 %s3017_s2, 4  ;;  %s665_s27 = int_to_ptr.vmem [resolvable:$true] %s664_s27 }
  0x80   : > { %s2680_s0 = scalar_lea.hbm %s3937_s16, 4096 }
  0x81   : > { %p2681_p13 = scmp.ne.s32.totalorder %s3937_s16, %s2680_s0  ;;  %p2687_p5 = scmp.lt.u32.totalorder %s2680_s0, %s3937_s16 }
  0x83   : > { %p2683_p0 = pnand %p2681_p13, %p3198_p8 }
  0x85   : > { %p2684_p2 = pneg %p2683_p0 }
  0x87   : > { %p2689_p7 = pnand %p2687_p5, %p2684_p2 }
  0x89   : > { %2692 = shalt.err (!%p2689_p7)
}
  0x8a   : > { %s2693_s26 = scalar_lea.vmem %s665_s27, 4096  ;;  %p2701_p11 = scmp.lt.s32.totalorder %s665_s27, %s665_s27 }
  0x8b   : > { %p2694_p9 = scmp.ne.s32.totalorder %s665_s27, %s2693_s26  ;;  %p2702_p12 = scmp.lt.s32.totalorder %s2693_s26, %s2693_s26 }
  0x8d   : > { %p2696_p4 = pnand %p2694_p9, %p3198_p8  ;;  %p2703_p1 = por %p2702_p12, %p2701_p11 }
  0x8f   : > { %p2697_p10 = pneg %p2696_p4 }
  0x91   : > { %p2704_p3 = pnand %p2703_p1, %p2697_p10 }
  0x93   : > { %2707 = shalt.err (!%p2704_p3)
}
  0x94   : > { %2431 = dma.hbm_to_vmem [thread:$0]  (!%p3182_p6), %s3937_s16, 4096, %s665_s27, [#allocation14], %s3885_s11, %s3885_s11, %s3887_s14  }
  0x95   : > { %s3886_s19 = sadd.s32 4294967294, %s3008_s30   ;;  %s3294_s15 = sadd.s32 1, %s3008_s30  }
  0x96   : > { %3938 = sst [smem:[#allocation32_spill]] %s3294_s15  ;;  %s51_s17 = ssub.s32 %s3008_s30, %s3294_s15 }
  0x97   : > { %s54_s2 = sadd.s32 1, %s3004_s29  ;;  %p52_p1 = scmp.eq.s32.totalorder %s51_s17, 0 }
  0x98   : > { %p61_p3 = scmp.ne.s32.totalorder %s3004_s29, %s3000_s28  ;;  %p62_p13 = scmp.eq.s32.totalorder %s3008_s30, 0 }
  0x99   : > { %p67_p0 = scmp.ne.s32.totalorder %s3000_s28, %s2996_s3  ;;  %p3941_p5 = scmp.eq.s32.totalorder %s3166_s23, 0 }
  0x9a   : > { %s3305_s25 = scalar_select %p52_p1, %s3004_s29, %s54_s2  }
  0x9b   : > { %p3307_p2 = por %p62_p13, %p61_p3  ;;  %p3313_p7 = por %p3941_p5, %p67_p0 }
  0x9c   : > { %3939 = sst [smem:[#allocation33_spill]] %s3305_s25  ;;  %p500_p9 = scmp.eq.s32.totalorder %s3166_s23, 1 }
  0x9d   : > { %s3942_s27 = scalar_select %p3313_p7, 1, 0 }
  0x9e   : > { %p506_p4 = scmp.eq.s32.totalorder %s3886_s19, 1  ;;  %p2458_p10 = scmp.lt.s32.totalorder %s3008_s30, 2 }
  0x9f   : > { %p3322_p11 = por %p500_p9, %p61_p3  ;;  %s689_s4 = sand.u32 1, %s3004_s29  }
  0xa0   : > { %p3326_p12 = por %p506_p4, %p67_p0  ;;  %s3331_s21 = sshll.u32 %s689_s4, 5 }
  0xa1   : > { %s3943_s24 = scalar_select %p3322_p11, 1, 0 }
  0xa2   : > { %s3945_s26 = scalar_select %p3326_p12, 1, 0 }
  0xa3   : > { %3944 = sst [smem:[#allocation34_spill]] %s3943_s24  ;;  %s3334_s17 = sshll.u32 %s3008_s30, 9 }
  0xa4   : > { %3946 = sst [smem:[#allocation35_spill]] %s3945_s26  ;;  %s3947_s19 = sld [smem:[#allocation36_spill]] }
  0xa5   : > { %s691_s0 = scalar_lea.vmem [#allocation2], %s3331_s21  ;;  %p3345_p1 = pnand %p2458_p10, %p3307_p2 }
  0xa6   : > { %s698_s16 = sshll.u32 %s691_s0, 4  ;;  %s3018_s4 = smov [#allocation11]   ;;  %s3349_s16 = int_to_ptr.vmem [resolvable:$true] %s698_s16 }
  0xa7   : > { %s3948_s18 = scalar_select %p3345_p1, 1, 0 }
  0xa8   : > { %s3351_s22 = sshll.u32 %s3018_s4, 4  ;;  %s3949_s11 = sand.u32 1, %s3008_s30   ;;  %s621_s22 = int_to_ptr.vmem [resolvable:$true] %s3351_s22 }
  0xa9   : > { %s3355_s2 = scalar_lea.sflag [#allocation3], %s3949_s11  ;;  %p3361_p13 = pneg %p3345_p1 }
  0xaa   : > { %s3340_s14 = scalar_lea.hbm %s3947_s19, %s3334_s17  ;;  %s2713_s15 = scalar_lea.hbm %s3947_s19, 1024 }
  0xab   : > { %s2708_s25 = scalar_lea.hbm %s3340_s14, 512  ;;  %p2714_p5 = scmp.lt.u32.totalorder %s3340_s14, %s3947_s19 }
  0xac   : > { %p2709_p3 = scmp.ne.s32.totalorder %s3340_s14, %s2708_s25  ;;  %p2715_p9 = scmp.lt.u32.totalorder %s2713_s15, %s2708_s25 }
  0xad   : > { %s3950_s29 = scalar_select %p3361_p13, 1, 0 }
  0xae   : > { %p2711_p0 = pnand %p3361_p13, %p2709_p3  ;;  %p2716_p4 = por %p2715_p9, %p2714_p5 }
  0xaf   : > { %p2717_p10 = scmp.lt.u32.totalorder %s2708_s25, %s3340_s14 }
  0xb0   : > { %p2712_p2 = pneg %p2711_p0 }
  0xb1   : > { %p2718_p12 = por %p2717_p10, %p2716_p4 }
  0xb3   : > { %p2719_p11 = pnand %p2718_p12, %p2712_p2 }
  0xb5   : > { %2722 = shalt.err (!%p2719_p11)
}
  0xb6   : > { %s2723_s11 = scalar_lea.vmem %s3349_s16, 512  ;;  %s3019_s20 = smov [#allocation2]  }
  0xb7   : > { %p2724_p3 = scmp.ne.s32.totalorder %s3349_s16, %s2723_s11  ;;  %s2728_s0 = sshll.u32 %s3019_s20, 4  ;;  %s2729_s0 = int_to_ptr.vmem [resolvable:$false] %s2728_s0 }
  0xb8   : > { %s2730_s26 = scalar_lea.vmem %s2729_s0, 1024  ;;  %p2731_p6 = scmp.lt.s32.totalorder %s3349_s16, %s2729_s0 }
  0xb9   : > { %p2726_p0 = pnand %p2724_p3, %p3361_p13  ;;  %p2732_p8 = scmp.lt.s32.totalorder %s2730_s26, %s2723_s11 }
  0xbb   : > { %p2727_p7 = pneg %p2726_p0  ;;  %p2733_p5 = por %p2732_p8, %p2731_p6 }
  0xbd   : > { %p2734_p9 = pnand %p2733_p5, %p2727_p7 }
  0xbf   : > { %2737 = shalt.err (!%p2734_p9)
}
  0xc0   : > { %s3951_s15 = smov 16   ;;  %s3952_s25 = smov 256  }
  0xc1   : > { %2435 = dma.hbm_to_vmem [thread:$0]  (!%p3345_p1), %s3340_s14, 512, %s3349_s16, %s3355_s2, %s3952_s25, %s3952_s25, %s3951_s15  }
  0xc2   : > { %s2738_s0 = scalar_lea.hbm %s3856_s7, 512  ;;  %p3953_p8 = scmp.ne.s32.totalorder %s3934_s5, 0 }
  0xc3   : > { %p2739_p6 = scmp.ne.s32.totalorder %s3856_s7, %s2738_s0  ;;  %p2745_p12 = scmp.lt.u32.totalorder %s2738_s0, %s3856_s7 }
  0xc5   : > { %p2741_p7 = pnand %p2739_p6, %p3953_p8 }
  0xc7   : > { %p2742_p11 = pneg %p2741_p7 }
  0xc9   : > { %p2747_p2 = pnand %p2745_p12, %p2742_p11 }
  0xcb   : > { %2750 = shalt.err (!%p2747_p2)
}
  0xcc   : > { %s2751_s24 = scalar_lea.vmem %s621_s22, 512  ;;  %p2759_p0 = scmp.lt.s32.totalorder %s621_s22, %s621_s22 }
  0xcd   : > { %p2752_p4 = scmp.ne.s32.totalorder %s621_s22, %s2751_s24  ;;  %p2760_p5 = scmp.lt.s32.totalorder %s2751_s24, %s2751_s24 }
  0xcf   : > { %p2754_p10 = pnand %p2752_p4, %p3953_p8  ;;  %p2761_p9 = por %p2760_p5, %p2759_p0 }
  0xd1   : > { %p2755_p3 = pneg %p2754_p10 }
  0xd3   : > { %p2762_p1 = pnand %p2761_p9, %p2755_p3 }
  0xd5   : > { %2765 = shalt.err (!%p2762_p1)
}
  0xd6   : > { %s3020_s16 = smov 128   ;;  %s3021_s14 = smov 8  }
  0xd7   : > { %p3954_p6 = scmp.ne.s32.totalorder %s3932_s6, 0  ;;  %s3022_s15 = smov [#allocation12]  }
  0xd8   : > { %s639_s25 = sshll.u32 %s3022_s15, 4  ;;  %s3955_s20 = sld [smem:[#allocation42_spill]]  ;;  %s640_s25 = int_to_ptr.vmem [resolvable:$true] %s639_s25 }
  0xd9   : > { %2425 = dma.hbm_to_vmem [thread:$0]  (!%p3954_p6), %s3856_s7, 512, %s621_s22, [#allocation6], %s3020_s16, %s3020_s16, %s3021_s14  }
  0xda   : > { %s2766_s9 = scalar_lea.hbm %s3859_s10, 1024 }
  0xdb   : > { %p2767_p1 = scmp.ne.s32.totalorder %s3859_s10, %s2766_s9  ;;  %p2773_p12 = scmp.lt.u32.totalorder %s2766_s9, %s3859_s10 }
  0xdd   : > { %p2769_p7 = pnand %p2767_p1, %p3953_p8 }
  0xde   : > { %s3414_s0 = scalar_lea.hbm %s3955_s20, %s3334_s17 }
  0xdf   : > { %p2770_p11 = pneg %p2769_p7 }
  0xe1   : > { %p2775_p2 = pnand %p2773_p12, %p2770_p11 }
  0xe3   : > { %2778 = shalt.err (!%p2775_p2)
}
  0xe4   : > { %s2779_s19 = scalar_lea.vmem %s640_s25, 1024  ;;  %p2787_p0 = scmp.lt.s32.totalorder %s640_s25, %s640_s25 }
  0xe5   : > { %p2780_p4 = scmp.ne.s32.totalorder %s640_s25, %s2779_s19  ;;  %p2788_p5 = scmp.lt.s32.totalorder %s2779_s19, %s2779_s19 }
  0xe7   : > { %p2782_p10 = pnand %p2780_p4, %p3953_p8  ;;  %p2789_p9 = por %p2788_p5, %p2787_p0 }
  0xe9   : > { %p2783_p3 = pneg %p2782_p10 }
  0xeb   : > { %p2790_p13 = pnand %p2789_p9, %p2783_p3 }
  0xed   : > { %2793 = shalt.err (!%p2790_p13)
}
  0xee   : > { %s3956_s8 = smov 4   ;;  %s3957_s13 = smov 64  }
  0xef   : > { %2428 = dma.hbm_to_vmem [thread:$0]  (!%p3954_p6), %s3859_s10, 1024, %s640_s25, [#allocation9], %s3957_s13, %s3957_s13, %s3956_s8  }
  0xf0   : > { %s712_s5 = scalar_lea.vmem [#allocation10], %s3331_s21  ;;  %s2794_s4 = scalar_lea.hbm %s3414_s0, 512 }
  0xf1   : > { %s719_s24 = sshll.u32 %s712_s5, 4  ;;  %p2795_p13 = scmp.ne.s32.totalorder %s3414_s0, %s2794_s4  ;;  %s3438_s24 = int_to_ptr.vmem [resolvable:$true] %s719_s24 }
  0xf2   : > { %p3958_p8 = scmp.ne.s32.totalorder %s3950_s29, 0  ;;  %s2799_s26 = scalar_lea.hbm %s3955_s20, 1024 }
  0xf3   : > { %p2800_p11 = scmp.lt.u32.totalorder %s3414_s0, %s3955_s20  ;;  %p2801_p12 = scmp.lt.u32.totalorder %s2799_s26, %s2794_s4 }
  0xf4   : > { %p2797_p1 = pnand %p2795_p13, %p3958_p8  ;;  %p2803_p6 = scmp.lt.u32.totalorder %s2794_s4, %s3414_s0 }
  0xf5   : > { %p2802_p2 = por %p2801_p12, %p2800_p11 }
  0xf6   : > { %p2798_p7 = pneg %p2797_p1 }
  0xf7   : > { %p2804_p4 = por %p2803_p6, %p2802_p2 }
  0xf9   : > { %p2805_p10 = pnand %p2804_p4, %p2798_p7 }
  0xfb   : > { %2808 = shalt.err (!%p2805_p10)
}
  0xfc   : > { %s2809_s25 = scalar_lea.vmem %s3438_s24, 512  ;;  %s3023_s19 = smov [#allocation10]  }
  0xfd   : > { %p2810_p3 = scmp.ne.s32.totalorder %s3438_s24, %s2809_s25  ;;  %s2814_s8 = sshll.u32 %s3023_s19, 4  ;;  %s2815_s8 = int_to_ptr.vmem [resolvable:$false] %s2814_s8 }
  0xfe   : > { %s2816_s13 = scalar_lea.vmem %s2815_s8, 1024  ;;  %p2817_p9 = scmp.lt.s32.totalorder %s3438_s24, %s2815_s8 }
  0xff   : > { %p2812_p0 = pnand %p2810_p3, %p3958_p8  ;;  %p2818_p13 = scmp.lt.s32.totalorder %s2816_s13, %s2809_s25 }
 0x101   : > { %p2813_p5 = pneg %p2812_p0  ;;  %p2819_p1 = por %p2818_p13, %p2817_p9 }
 0x103   : > { %p2820_p11 = pnand %p2819_p1, %p2813_p5 }
 0x105   : > { %2823 = shalt.err (!%p2820_p11)
}
 0x106   : > { %p3959_p7 = scmp.ne.s32.totalorder %s3948_s18, 0  ;;  %s3469_s5 = scalar_lea.hbm %s3861_s12, %s3334_s17 }
 0x107   : > { %s733_s4 = scalar_lea.vmem [#allocation13], %s3331_s21  ;;  %s3960_s11 = sand.u32 1, %s3008_s30  }
 0x108   : > { %2438 = dma.hbm_to_vmem [thread:$0]  (!%p3959_p7), %s3414_s0, 512, %s3438_s24, %s3355_s2, %s3020_s16, %s3020_s16, %s3021_s14  }
 0x109   : > { %s741_s6 = sshll.u32 %s733_s4, 4  ;;  %s730_s26 = scalar_lea.sflag [#allocation14], %s3960_s11  ;;  %s742_s6 = int_to_ptr.vmem [resolvable:$true] %s741_s6 }
 0x10a   : > { %s2824_s22 = scalar_lea.hbm %s3469_s5, 512  ;;  %s2829_s14 = scalar_lea.hbm %s3861_s12, 1024 }
 0x10b   : > { %p2825_p12 = scmp.ne.s32.totalorder %s3469_s5, %s2824_s22  ;;  %p2830_p4 = scmp.lt.u32.totalorder %s3469_s5, %s3861_s12 }
 0x10c   : > { %p2831_p10 = scmp.lt.u32.totalorder %s2829_s14, %s2824_s22  ;;  %p2833_p0 = scmp.lt.u32.totalorder %s2824_s22, %s3469_s5 }
 0x10d   : > { %p2827_p2 = pnand %p2825_p12, %p3958_p8 }
 0x10e   : > { %p2832_p3 = por %p2831_p10, %p2830_p4 }
 0x10f   : > { %p2828_p6 = pneg %p2827_p2 }
 0x110   : > { %p2834_p5 = por %p2833_p0, %p2832_p3 }
 0x112   : > { %p2835_p9 = pnand %p2834_p5, %p2828_p6 }
 0x114   : > { %2838 = shalt.err (!%p2835_p9)
}
 0x115   : > { %s2839_s21 = scalar_lea.vmem %s742_s6, 512  ;;  %s3024_s24 = smov [#allocation13]  }
 0x116   : > { %p2840_p13 = scmp.ne.s32.totalorder %s742_s6, %s2839_s21  ;;  %s2844_s3 = sshll.u32 %s3024_s24, 4  ;;  %s2845_s3 = int_to_ptr.vmem [resolvable:$false] %s2844_s3 }
 0x117   : > { %s2846_s25 = scalar_lea.vmem %s2845_s3, 1024  ;;  %p2847_p12 = scmp.lt.s32.totalorder %s742_s6, %s2845_s3 }
 0x118   : > { %p2842_p1 = pnand %p2840_p13, %p3958_p8  ;;  %p2848_p2 = scmp.lt.s32.totalorder %s2846_s25, %s2839_s21 }
 0x11a   : > { %p2843_p11 = pneg %p2842_p1  ;;  %p2849_p7 = por %p2848_p2, %p2847_p12 }
 0x11c   : > { %p2850_p4 = pnand %p2849_p7, %p2843_p11 }
 0x11e   : > { %2853 = shalt.err (!%p2850_p4)
}
 0x11f   : > { %p3961_p10 = scmp.ne.s32.totalorder %s3948_s18, 0  ;;  %p3962_p6 = scmp.ne.s32.totalorder %s3931_s1, 0 }
 0x120   : > { %s3494_s29 = sand.u32 (!%p3962_p6), 1, %s3166_s23   ;;  %s3497_s19 = sand.u32 (!%p3962_p6), 1, %s3000_s28  }
 0x121   : > { %2441 = dma.hbm_to_vmem [thread:$0]  (!%p3961_p10), %s3469_s5, 512, %s742_s6, %s730_s26  }
 0x122   : > { %750 = sbr.rel (%p3962_p6) target bundleno = 1255 (0x4e7), region = 100  ;;  %s3500_s8 = sshll.u32 (!%p3962_p6), %s3497_s19, 5 }
 0x123   : > { %s753_s13 = scalar_lea.sflag (!%p3962_p6), [#allocation3], %s3494_s29  ;;  %s3504_s15 = scalar_lea.vmem (!%p3962_p6), [#allocation2], %s3500_s8 }
 0x124   : > { %p3963_p8 = scmp.ne.s32.totalorder (!%p3962_p6), %s3942_s27, 0 }
 0x129   : > { %2955 = dma.done.wait (%p3963_p8), %s753_s13, 512  }
 0x12a   : > { %2957 = vsyncadd (%p3963_p8), %s753_s13, 4294966784  ;;  %p3964_p7 = scmp.eq.s32.totalorder %s3166_s23, 0 }
 0x12c   : > { %2959 = dma.done.wait (%p3964_p7), [#allocation6], 544   ;;  %p3965_p3 = pmov %p3964_p7 }
 0x12e   : > { %2961 = vsyncadd (%p3965_p3), [#allocation6], 4294966752  ;;  %p3966_p0 = pmov %p3965_p3 }
 0x130   : > { %2963 = dma.done.wait (%p3966_p0), [#allocation9], 2048   ;;  %p3967_p5 = pmov %p3966_p0 }
 0x131   : > { %s3519_s18 = scalar_lea.vmem [#allocation10], %s3500_s8 }
 0x132   : > { %2965 = vsyncadd (%p3967_p5), [#allocation9], 4294965248 }
 0x133   : > { %2967 = dma.done.wait (%p3963_p8), %s753_s13, 512  }
 0x134   : > { %2969 = vsyncadd (%p3963_p8), %s753_s13, 4294966784  ;;  %p3968_p9 = pmov %p3966_p0 }
 0x135   : > { %p3969_p13 = pmov %p3966_p0 }
 0x136   : > { %2971 = dma.done.wait (%p3968_p9), [#allocation6], 512  }
 0x137   : > { %2973 = vsyncadd (%p3969_p13), [#allocation6], 4294966784  ;;  %p3970_p1 = pmov %p3966_p0 }
 0x138   : > { %p3971_p11 = pmov %p3966_p0 }
 0x139   : > { %2975 = dma.done.wait (%p3970_p1), [#allocation9], 1024  }
 0x13a   : > { %2977 = vsyncadd (%p3971_p11), [#allocation9], 4294966272  ;;  %s791_s1 = scalar_lea.sflag [#allocation14], %s3494_s29  ;;  %s3535_s9 = scalar_lea.vmem [#allocation13], %s3500_s8 }
 0x13b   : > { %2979 = dma.done.wait (%p3963_p8), %s791_s1, 512  }
 0x13c   : > { %2981 = vsyncadd (%p3963_p8), %s791_s1, 4294966784  ;;  %p3972_p12 = pmov %p3966_p0 }
 0x13d   : > { %p3973_p2 = pmov %p3966_p0 }
 0x13e   : > { %2983 = dma.done.wait (%p3972_p12), [#allocation14], 4096  }
 0x13f   : > { %2985 = vsyncadd (%p3973_p2), [#allocation14], 4294963200  ;;  %v1178_v0 = vld [vmem:[%s3519_s18] sm:$0xff]  ;;  %v1179_v9 = vld [vmem:[%s3519_s18 + $0x8] sm:$0xff]  ;;  %s3974_s4 = sld [smem:[#allocation46_spill]]  ;;  %s3975_s0 = sld [smem:[#allocation43_spill]] }
 0x140   : > { %v1182_v1 = vld [vmem:[#allocation11] sm:$0xff]  ;;  %v1183_v10 = vld [vmem:[#allocation11 + $0x8] sm:$0xff]  ;;  %v885_v13 = vld [vmem:[%s3504_s15 + $0x18] sm:$0xff]  ;;  %s3976_s3 = sld [smem:[#allocation38_spill]]  ;;  %s3979_s6 = sld [smem:[#allocation48_spill]] }
 0x141   : > { %v882_v2 = vld [vmem:[%s3504_s15] sm:$0xff]  ;;  %v1186_v3 = vadd.f32 %v1182_v1, %v1178_v0  ;;  %v883_v4 = vld [vmem:[%s3504_s15 + $0x8] sm:$0xff]  ;;  %v884_v11 = vld [vmem:[%s3504_s15 + $0x10] sm:$0xff]  ;;  %v1187_v12 = vadd.f32 %v1183_v10, %v1179_v9  ;;  %s3977_s15 = sld [smem:[#allocation44_spill]]  ;;  %s3980_s22 = sld [smem:[#allocation45_spill]] }
 0x142   : > { %v886_v5 = vld [vmem:[#allocation5] sm:$0xff]  ;;  %v887_v6 = vld [vmem:[#allocation5 + $0x8] sm:$0xff]  ;;  %v888_v14 = vld [vmem:[#allocation5 + $0x10] sm:$0xff]  ;;  %s3981_s14 = sld [smem:[#allocation41_spill]]  ;;  %s3982_s21 = sld [smem:[#allocation50_spill]] }
 0x143   : > { %v890_v7 = vadd.f32 %v886_v5, %v882_v2  ;;  %v891_v8 = vadd.f32 %v887_v6, %v883_v4  ;;  %1190 = vadd.xlane.f32.xlu1 %v1186_v3  ;;  %v889_v15 = vld [vmem:[#allocation5 + $0x18] sm:$0xff]  ;;  %v892_v17 = vadd.f32 %v888_v14, %v884_v11  ;;  %v1434_v23 = vld [vmem:[%s3535_s9] sm:$0xff]  ;;  %v1435_v24 = vld [vmem:[%s3535_s9 + $0x8] sm:$0xff]  ;;  %s3983_s25 = sld [smem:[#allocation51_spill]]  ;;  %s2200_s1 = sshll.u32 %s3497_s19, 4 }
 0x144   : > { %v893_v18 = vadd.f32 %v889_v15, %v885_v13  ;;  %v1181_v19 = vld [vmem:[%s3519_s18 + $0x18] sm:$0xff]  ;;  %v1180_v20 = vld [vmem:[%s3519_s18 + $0x10] sm:$0xff]  ;;  %v2512_v13 = vld [vmem:[#allocation8 + $0x40] sm:$0xff]   ;;  %s3984_s18 = sld [smem:[#allocation52_spill]]  ;;  %s2280_s27 = sshll.u32 %s3166_s23, 9 }
 0x145   : > { %v894_v16 = vadd.f32 %v891_v8, %v890_v7  ;;  %v1184_v21 = vld [vmem:[#allocation11 + $0x10] sm:$0xff]  ;;  %v1185_v22 = vld [vmem:[#allocation11 + $0x18] sm:$0xff]  ;;  %v1439_v30 = vld [vmem:[%s3974_s4 + $0x8] sm:$0xff]  ;;  %2281 = vmatprep.subr.bf16.mxu0 %v2512_v13  ;;  %s3986_s26 = sld [smem:[#allocation54_spill]]  ;;  %s2279_s2 = sshll.u32 %s3166_s23, 8 }
 0x146   : > { %v897_v25 = vadd.f32 %v893_v18, %v892_v17  ;;  %v1436_v26 = vld [vmem:[%s3535_s9 + $0x10] sm:$0xff]  ;;  %v1437_v27 = vld [vmem:[%s3535_s9 + $0x18] sm:$0xff]  ;;  %v1189_v29 = vadd.f32 %v1185_v22, %v1181_v19  ;;  %v1443_v34 = vadd.f32 %v1439_v30, %v1435_v24  ;;  %v1188_v36 = vadd.f32 %v1184_v21, %v1180_v20  ;;  %v2514_v20 = vld [vmem:[#allocation12] sm:$0xff]   ;;  %s3978_s9 = sld [smem:[#allocation47_spill]]  ;;  %s3727_s16 = scalar_lea.vmem [#allocation16], %s2200_s1 }
 0x147   : > { %895 = vadd.xlane.f32.xlu0 %v894_v16  ;;  %v1438_v28 = vld [vmem:[%s3974_s4] sm:$0xff]  ;;  %1192 = vadd.xlane.f32.xlu1 %v1187_v12  ;;  %v1440_v31 = vld [vmem:[%s3974_s4 + $0x10] sm:$0xff]  ;;  %v1441_v32 = vld [vmem:[%s3974_s4 + $0x18] sm:$0xff]  ;;  %s1892_s17 = scalar_lea.sflag [#allocation18], %s3494_s29 }
 0x148   : > { %v1442_v33 = vadd.f32 %v1438_v28, %v1434_v23  ;;  %v1444_v35 = vadd.f32 %v1440_v31, %v1436_v26  ;;  %v1445_v37 = vadd.f32 %v1441_v32, %v1437_v27  ;;  %v2515_v21 = vld [vmem:[#allocation8 + $0x48] sm:$0xff]   ;;  %2357 = vmatprep.subr.bf16.mxu1 %v2514_v20  ;;  %v2518_v26 = vld [vmem:[#allocation8 + $0x50] sm:$0xff]   ;;  %v2522_v30 = vld [vmem:[#allocation8 + $0x18] sm:$0xff]  }
 0x149   : > { %v2516_v23 = vld [vmem:[#allocation8 + $0x8] sm:$0xff]   ;;  %2358 = vmatpush3.bf16.msra.mxu1 %v2514_v20  ;;  %v2519_v27 = vld [vmem:[#allocation8 + $0x10] sm:$0xff]   ;;  %v2523_v31 = vld [vmem:[#allocation12 + $0x18] sm:$0xff]  }
 0x14a   : > { %v1446_v38 = vadd.f32 %v1443_v34, %v1442_v33  ;;  %v2520_v28 = vld [vmem:[#allocation12 + $0x10] sm:$0xff]   ;;  %v2524_v32 = vld [vmem:[#allocation8 + $0x60] sm:$0xff]  }
 0x14b   : > { %898 = vadd.xlane.f32.xlu0 %v897_v25  ;;  %1196 = vadd.xlane.f32.xlu1 %v1189_v29  ;;  %v2517_v25 = vld [vmem:[#allocation12 + $0x8] sm:$0xff]  }
 0x14c   : > { %v1447_v39 = vadd.f32 %v1446_v38, %v1444_v35  ;;  %2359 = vmatprep.subr.bf16.mxu1 %v2517_v25  ;;  %v2530_v38 = vld [vmem:[#allocation8 + $0x70] sm:$0xff]  }
 0x14d   : > { %2360 = vmatpush3.bf16.msra.mxu1 %v2517_v25 }
 0x14e   : > { %v1448_v40 = vadd.f32 %v1447_v39, %v1445_v37  ;;  %2361 = vmatprep.subr.bf16.mxu1 %v2520_v28  ;;  %v2531_v39 = vld [vmem:[#allocation8 + $0x30] sm:$0xff]  }
 0x14f   : > { %1194 = vadd.xlane.f32.xlu0 %v1188_v36 }
 0x151   : > { %2362 = vmatpush3.bf16.msra.mxu1 %v2520_v28 }
 0x152   : > { %2363 = vmatprep.subr.bf16.mxu1 %v2523_v31 }
 0x153   : > { %1449 = vadd.xlane.f32.xlu0 %v1448_v40  ;;  %v2532_v40 = vld [vmem:[#allocation12 + $0x30] sm:$0xff]  }
 0x155   : > { %2364 = vmatpush3.bf16.msra.mxu1 %v2523_v31 }
 0x1d0   : > { %v1191_v41 = vpop.xlane.xlu1 %1190 }
 0x1d1   : > { %v1198_v42 = vmul.f32 0.0078125, %v1191_v41  ;;  %v2533_v41 = vld [vmem:[#allocation8 + $0x78] sm:$0xff]  }
 0x1d3   : > { %v3569_v43 = vsub.f32 %v1186_v3, %v1198_v42  ;;  %v2534_v42 = vld [vmem:[#allocation8 + $0x38] sm:$0xff]  }
 0x1d4   : > { %v896_v44 = vpop.xlane.xlu0 %895  ;;  %v1193_v46 = vpop.xlane.xlu1 %1192 }
 0x1d5   : > { %v901_v45 = vmul.f32 0.00390625, %v896_v44  ;;  %v1199_v47 = vmul.f32 0.0078125, %v1193_v46  ;;  %v1206_v48 = vmul.f32 %v3569_v43, %v3569_v43  ;;  %v2535_v44 = vld [vmem:[#allocation12 + $0x38] sm:$0xff]   ;;  %v2538_v46 = vld [vmem:[#allocation15 + $0xc0] sm:$0xff]  }
 0x1d7   : > { %v3573_v49 = vsub.f32 %v890_v7, %v901_v45  ;;  %v3575_v50 = vsub.f32 %v891_v8, %v901_v45  ;;  %v3577_v51 = vsub.f32 %v1187_v12, %v1199_v47  ;;  %1210 = vadd.xlane.f32.xlu1 %v1206_v48  ;;  %v2536_v45 = vld [vmem:[#allocation15 + $0x40] sm:$0xff]  }
 0x1d8   : > { %v899_v52 = vpop.xlane.xlu0 %898  ;;  %v1197_v56 = vpop.xlane.xlu1 %1196 }
 0x1d9   : > { %v902_v53 = vmul.f32 0.00390625, %v899_v52  ;;  %v907_v54 = vmul.f32 %v3573_v49, %v3573_v49  ;;  %v908_v55 = vmul.f32 %v3575_v50, %v3575_v50  ;;  %v1207_v57 = vmul.f32 %v3577_v51, %v3577_v51 }
 0x1da   : > { %v1201_v58 = vmul.f32 0.0078125, %v1197_v56 }
 0x1db   : > { %v3585_v59 = vsub.f32 %v892_v17, %v902_v53  ;;  %v3587_v60 = vsub.f32 %v893_v18, %v902_v53  ;;  %v911_v61 = vadd.f32 %v908_v55, %v907_v54  ;;  %1212 = vadd.xlane.f32.xlu0 %v1207_v57  ;;  %v2513_v17 = vld [vmem:[#allocation8] sm:$0xff]  }
 0x1dc   : > { %v1195_v62 = vpop.xlane.xlu0 %1194  ;;  %v3589_v0 = vsub.f32 %v1189_v29, %v1201_v58  ;;  %2282 = vmatpush3.bf16.msra.mxu0 %v2513_v17  ;;  %v2521_v29 = vld [vmem:[#allocation8 + $0x58] sm:$0xff]   ;;  %v929_v58 = vlaneseq }
 0x1dd   : > { %v1200_v63 = vmul.f32 0.0078125, %v1195_v62  ;;  %912 = vadd.xlane.f32.xlu1 %v911_v61  ;;  %v909_v1 = vmul.f32 %v3585_v59, %v3585_v59  ;;  %v910_v2 = vmul.f32 %v3587_v60, %v3587_v60  ;;  %2283 = vmatprep.subr.bf16.mxu0 %v2515_v21  ;;  %v2222_v17 = vld [vmem:[%s3975_s0] ss:$0 sm:$0xff] }
 0x1de   : > { %v1209_v8 = vmul.f32 %v3589_v0, %v3589_v0 }
 0x1df   : > { %v3595_v3 = vsub.f32 %v1188_v36, %v1200_v63  ;;  %v914_v4 = vadd.f32 %v910_v2, %v909_v1  ;;  %v2528_v36 = vld [vmem:[#allocation8 + $0x28] sm:$0xff]   ;;  %v3617_v2 = vshrl.u32 %v929_v58, 7 }
 0x1e0   : > { %v1450_v5 = vpop.xlane.xlu0 %1449  ;;  %2284 = vmatpush3.bf16.msra.mxu0 %v2516_v23  ;;  %v2539_v58 = vld [vmem:[#allocation15 + $0x48] sm:$0xff]  }
 0x1e1   : > { %v1452_v6 = vmul.f32 0.001953125, %v1450_v5  ;;  %915 = vadd.xlane.f32.xlu0 %v914_v4  ;;  %v1208_v7 = vmul.f32 %v3595_v3, %v3595_v3  ;;  %2285 = vmatprep.subr.bf16.mxu0 %v2518_v26  ;;  %v943_v26 = vld [vmem:[#allocation7] sm:$0x3] }
 0x1e3   : > { %v3601_v9 = vsub.f32 %v1442_v33, %v1452_v6  ;;  %v3603_v10 = vsub.f32 %v1443_v34, %v1452_v6  ;;  %1214 = vadd.xlane.f32.xlu1 %v1208_v7  ;;  %v3605_v11 = vsub.f32 %v1444_v35, %v1452_v6  ;;  %v3607_v12 = vsub.f32 %v1445_v37, %v1452_v6  ;;  %v2525_v33 = vld [vmem:[#allocation8 + $0x20] sm:$0xff]   ;;  %v2527_v35 = vld [vmem:[#allocation8 + $0x68] sm:$0xff]  }
 0x1e4   : > { %2286 = vmatpush3.bf16.msra.mxu0 %v2519_v27  ;;  %v2526_v34 = vld [vmem:[#allocation12 + $0x20] sm:$0xff]   ;;  %v2529_v37 = vld [vmem:[#allocation12 + $0x28] sm:$0xff]  }
 0x1e5   : > { %1216 = vadd.xlane.f32.xlu0 %v1209_v8  ;;  %v1457_v14 = vmul.f32 %v3601_v9, %v3601_v9  ;;  %v1458_v15 = vmul.f32 %v3603_v10, %v3603_v10  ;;  %v1459_v16 = vmul.f32 %v3605_v11, %v3605_v11  ;;  %v1460_v18 = vmul.f32 %v3607_v12, %v3607_v12 }
 0x1e6   : > { %2287 = vmatprep.subr.bf16.mxu0 %v2521_v29  ;;  %2365 = vmatprep.subr.bf16.mxu1 %v2526_v34 }
 0x1e7   : > { %v1461_v19 = vadd.f32 %v1458_v15, %v1457_v14  ;;  %2366 = vmatpush3.bf16.msra.mxu1 %v2526_v34  ;;  %v3620_v14 = vsub.s32 0, %v3617_v2 }
 0x1e8   : > { %2288 = vmatpush3.bf16.msra.mxu0 %v2522_v30  ;;  %2367 = vmatprep.subr.bf16.mxu1 %v2529_v37 }
 0x1e9   : > { %v1462_v22 = vadd.f32 %v1461_v19, %v1459_v16  ;;  %2289 = vmatprep.subr.bf16.mxu0 %v2524_v32  ;;  %v927_v19 = vld [vmem:[%s3976_s3] sm:$0x3] }
 0x1eb   : > { %v1463_v24 = vadd.f32 %v1462_v22, %v1460_v18  ;;  %2368 = vmatpush3.bf16.msra.mxu1 %v2529_v37  ;;  %v3627_v18 = vsub.s32 1, %v3617_v2 }
 0x1ec   : > { %2290 = vmatpush3.bf16.msra.mxu0 %v2525_v33  ;;  %2369 = vmatprep.subr.bf16.mxu1 %v2532_v40  ;;  %v948_v33 = vrot.slane %v943_v26, %v3620_v14 }
 0x1ed   : > { %1464 = vadd.xlane.f32.xlu1 %v1463_v24  ;;  %2291 = vmatprep.subr.bf16.mxu0 %v2527_v35  ;;  %v932_v24 = vrot.slane %v927_v19, %v3620_v14  ;;  %v936_v25 = vrot.slane %v927_v19, %v3627_v18 }
 0x1ef   : > { %2370 = vmatpush3.bf16.msra.mxu1 %v2532_v40 }
 0x1f0   : > { %2292 = vmatpush3.bf16.msra.mxu0 %v2528_v36  ;;  %2371 = vmatprep.subr.bf16.mxu1 %v2535_v44 }
 0x1f1   : > { %2293 = vmatprep.subr.bf16.mxu0 %v2530_v38 }
 0x1f3   : > { %2372 = vmatpush3.bf16.msra.mxu1 %v2535_v44 }
 0x1f4   : > { %2294 = vmatpush3.bf16.msra.mxu0 %v2531_v39  ;;  %2335 = vmatprep.subr.bf16.mxu1 %v2538_v46 }
 0x1f5   : > { %2295 = vmatprep.subr.bf16.mxu0 %v2533_v41 }
 0x1f8   : > { %2296 = vmatpush3.bf16.msra.mxu0 %v2534_v42 }
 0x1f9   : > { %2313 = vmatprep.subr.bf16.mxu0 %v2536_v45 }
 0x264   : > { %v1211_v47 = vpop.xlane.xlu1 %1210 }
 0x265   : > { %v1218_v48 = vmul.f32 0.0078125, %v1211_v47 }
 0x267   : > { %v1222_v52 = vadd.f32 1e-05, %v1218_v48 }
 0x268   : > { %v1213_v53 = vpop.xlane.xlu0 %1212 }
 0x269   : > { %2568 = vrsqrt.f32 %v1222_v52  ;;  %v1219_v55 = vmul.f32 0.0078125, %v1213_v53 }
 0x26a   : > { %v913_v54 = vpop.xlane.xlu1 %912 }
 0x26b   : > { %v917_v56 = vmul.f32 0.00390625, %v913_v54  ;;  %v1223_v57 = vadd.f32 1e-05, %v1219_v55 }
 0x26d   : > { %v919_v61 = vadd.f32 1e-05, %v917_v56  ;;  %2570 = vrsqrt.f32 %v1223_v57  ;;  %v2537_v56 = vld [vmem:[#allocation15] sm:$0xff]   ;;  %v1489_v57 = vsub.s32 3, %v3617_v2 }
 0x26e   : > { %v916_v62 = vpop.xlane.xlu0 %915 }
 0x26f   : > { %2572 = vrsqrt.f32 %v919_v61  ;;  %v918_v63 = vmul.f32 0.00390625, %v916_v62 }
 0x270   : > { %v1215_v1 = vpop.xlane.xlu1 %1214 }
 0x271   : > { %v920_v4 = vadd.f32 1e-05, %v918_v63  ;;  %v1220_v5 = vmul.f32 0.0078125, %v1215_v1  ;;  %v2540_v63 = vld [vmem:[#allocation15 + $0x80] sm:$0xff]  }
 0x272   : > { %v1217_v6 = vpop.xlane.xlu0 %1216 }
 0x273   : > { %2574 = vrsqrt.f32 %v920_v4  ;;  %v1224_v7 = vadd.f32 1e-05, %v1220_v5  ;;  %v1221_v8 = vmul.f32 0.0078125, %v1217_v6  ;;  %v2569_v13 = vpop.eup %2568  ;;  %v2541_v4 = vld [vmem:[#allocation15 + $0x8] sm:$0xff]  }
 0x274   : > { %v1230_v16 = vmul.f32 %v2569_v13, %v3569_v43  ;;  %v2223_v43 = vld [vmem:[%s3977_s15] ss:$0 sm:$0xff]  ;;  %v2542_v5 = vld [vmem:[#allocation15 + $0xc8] sm:$0xff]   ;;  %v2543_v13 = vld [vmem:[#allocation15 + $0x50] sm:$0xff]  }
 0x275   : > { %2576 = vrsqrt.f32 %v1224_v7  ;;  %v1225_v15 = vadd.f32 1e-05, %v1221_v8 }
 0x276   : > { %v1241_v21 = vmul.f32 %v2222_v17, %v1230_v16 }
 0x277   : > { %2578 = vrsqrt.f32 %v1225_v15  ;;  %v2571_v20 = vpop.eup %2570 }
 0x278   : > { %v1231_v23 = vmul.f32 %v2571_v20, %v3577_v51  ;;  %v1252_v32 = vadd.f32 %v2223_v43, %v1241_v21  ;;  %v952_v51 = vrot.slane %v943_v26, %v3627_v18  ;;  %v2544_v20 = vld [vmem:[#allocation15 + $0x88] sm:$0xff]   ;;  %v2545_v21 = vld [vmem:[#allocation15 + $0x10] sm:$0xff]  }
 0x279   : > { %v2573_v22 = vpop.eup %2572 }
 0x27a   : > { %v1465_v27 = vpop.xlane.xlu1 %1464  ;;  %v924_v28 = vmul.f32 %v2573_v22, %v3575_v50  ;;  %v923_v29 = vmul.f32 %v2573_v22, %v3573_v49  ;;  %v1242_v31 = vmul.f32 %v2222_v17, %v1231_v23  ;;  %v2546_v22 = vld [vmem:[#allocation15 + $0xd0] sm:$0xff]  }
 0x27b   : > { %v1466_v30 = vmul.f32 0.001953125, %v1465_v27  ;;  %v2549_v27 = vld [vmem:[#allocation15 + $0x18] sm:$0xff]  }
 0x27c   : > { %v1253_v36 = vadd.f32 %v2223_v43, %v1242_v31  ;;  %v940_v37 = vmul.f32 %v936_v25, %v924_v28  ;;  %v939_v38 = vmul.f32 %v932_v24, %v923_v29  ;;  %v2550_v28 = vld [vmem:[#allocation15 + $0xd8] sm:$0xff]   ;;  %v2551_v29 = vld [vmem:[#allocation15 + $0x60] sm:$0xff]  }
 0x27d   : > { %v2575_v34 = vpop.eup %2574  ;;  %v1467_v35 = vadd.f32 1e-05, %v1466_v30  ;;  %v2552_v30 = vld [vmem:[#allocation15 + $0x98] sm:$0xff]   ;;  %v2553_v31 = vld [vmem:[#allocation15 + $0x20] sm:$0xff]  }
 0x27e   : > { %v926_v39 = vmul.f32 %v2575_v34, %v3587_v60  ;;  %v925_v40 = vmul.f32 %v2575_v34, %v3585_v59  ;;  %v1256_v50 = vpack.c.bf16 %v1253_v36, %v1252_v32  ;;  %v956_v46 = vadd.f32 %v952_v51, %v940_v37  ;;  %v2554_v32 = vld [vmem:[#allocation15 + $0xe0] sm:$0xff]   ;;  %v2557_v34 = vld [vmem:[#allocation15 + $0x28] sm:$0xff]   ;;  %v2559_v37 = vld [vmem:[#allocation15 + $0x70] sm:$0xff]  }
 0x27f   : > { %v2577_v41 = vpop.eup %2576  ;;  %2580 = vrsqrt.f32 %v1467_v35  ;;  %v955_v47 = vadd.f32 %v948_v33, %v939_v38  ;;  %v2558_v35 = vld [vmem:[#allocation15 + $0xe8] sm:$0xff]   ;;  %v1485_v36 = vsub.s32 2, %v3617_v2 }
 0x280   : > { %v942_v49 = vmul.f32 %v936_v25, %v926_v39  ;;  %v941_v42 = vmul.f32 %v932_v24, %v925_v40  ;;  %v1232_v44 = vmul.f32 %v2577_v41, %v3595_v3  ;;  %2373 = vmatprep.mubr.bf16.mxu1 %v1256_v50  ;;  %v3650_v3 = vld [vmem:[%s3978_s9] sm:$0xf]  ;;  %v2560_v40 = vld [vmem:[#allocation15 + $0xa8] sm:$0xff]   ;;  %v2561_v41 = vld [vmem:[#allocation15 + $0x30] sm:$0xff]   ;;  %s871_s9 = scalar_lea.vmem [#allocation17], %s3500_s8  ;;  %s3985_s8 = sld [smem:[#allocation34_spill]] }
 0x281   : > { %v2579_v45 = vpop.eup %2578  ;;  %v1482_v6 = vrot.slane %v3650_v3, %v3627_v18  ;;  %v1490_v7 = vrot.slane %v3650_v3, %v1489_v57  ;;  %v2547_v24 = vld [vmem:[#allocation15 + $0x58] sm:$0xff]   ;;  %v1478_v39 = vrot.slane %v3650_v3, %v3620_v14  ;;  %v2562_v50 = vld [vmem:[#allocation15 + $0xf0] sm:$0xff]   ;;  %s1926_s5 = sshll.u32 %s871_s9, 4  ;;  %s3724_s5 = int_to_ptr.vmem [resolvable:$true] %s1926_s5 }
 0x282   : > { %v958_v48 = vadd.f32 %v952_v51, %v942_v49  ;;  %v957_v52 = vadd.f32 %v948_v33, %v941_v42  ;;  %v1233_v53 = vmul.f32 %v2579_v45, %v3589_v0  ;;  %v1243_v54 = vmul.f32 %v2222_v17, %v1232_v44  ;;  %v3655_v0 = vld [vmem:[%s3979_s6] sm:$0xf]  ;;  %v2555_v33 = vld [vmem:[#allocation15 + $0x68] sm:$0xff]   ;;  %s2854_s0 = scalar_lea.vmem %s3724_s5, 512 }
 0x283   : > { %v1508_v16 = vrot.slane %v3655_v0, %v3627_v18  ;;  %v1516_v19 = vrot.slane %v3655_v0, %v1489_v57  ;;  %v2556_v51 = vld [vmem:[#allocation15 + $0xa0] sm:$0xff]   ;;  %v1486_v42 = vrot.slane %v3650_v3, %v1485_v36  ;;  %v2563_v44 = vld [vmem:[#allocation15 + $0x78] sm:$0xff]   ;;  %v1504_v45 = vrot.slane %v3655_v0, %v3620_v14  ;;  %p2855_p4 = scmp.ne.s32.totalorder %s3724_s5, %s2854_s0 }
 0x284   : > { %v960_v55 = vpack.c.bf16 %v958_v48, %v956_v46  ;;  %v959_v60 = vpack.c.bf16 %v957_v52, %v955_v47  ;;  %v1244_v59 = vmul.f32 %v2222_v17, %v1233_v53  ;;  %v1254_v61 = vadd.f32 %v2223_v43, %v1243_v54  ;;  %v2565_v46 = vld [vmem:[#allocation15 + $0x38] sm:$0xff]  }
 0x285   : > { %v2566_v47 = vld [vmem:[#allocation15 + $0xf8] sm:$0xff]   ;;  %v1512_v52 = vrot.slane %v3655_v0, %v1485_v36 }
 0x286   : > { %1128 = vmatprep.mubr.bf16.mxu0 %v960_v55  ;;  %v1255_v62 = vadd.f32 %v2223_v43, %v1244_v59  ;;  %v2224_v59 = vld [vmem:[%s3980_s22] ss:$0 sm:$0xff]  ;;  %s3722_s22 = scalar_lea.hbm %s3986_s26, %s2280_s27  ;;  %p3987_p10 = scmp.ne.s32.totalorder %s3985_s8, 0 }
 0x287   : > { %1129 = vmatmul.mubr.bf16.vlgmr.msra.gmra.mrb[0].mxu0 %v959_v60 }
 0x288   : > { %2314 = vmatpush3.bf16.msra.mxu0 %v2537_v56  ;;  %v1257_v1 = vpack.c.bf16 %v1255_v62, %v1254_v61  ;;  %p2856_p6 = pnand %p2855_p4, %p3987_p10 }
 0x289   : > { %v2581_v8 = vpop.eup %2580  ;;  %2315 = vmatprep.subr.bf16.mxu0 %v2539_v58 }
 0x28a   : > { %2374 = vmatmul.mubr.bf16.vlgmr.msra.gmra.mrb[0].mxu1 %v1257_v1  ;;  %v1470_v15 = vmul.f32 %v2581_v8, %v3603_v10  ;;  %v1472_v17 = vmul.f32 %v2581_v8, %v3607_v12  ;;  %v2548_v10 = vld [vmem:[#allocation15 + $0x90] sm:$0xff]   ;;  %v1469_v38 = vmul.f32 %v2581_v8, %v3601_v9  ;;  %v1471_v49 = vmul.f32 %v2581_v8, %v3605_v11  ;;  %v2567_v11 = vld [vmem:[#allocation15 + $0xb8] sm:$0xff]   ;;  %p2857_p8 = pneg %p2856_p6 }
 0x28b   : > { %2336 = vmatpush3.bf16.msra.mxu1 %v2540_v63  ;;  %v2564_v9 = vld [vmem:[#allocation15 + $0xb0] sm:$0xff]  }
 0x28c   : > { %2316 = vmatpush3.bf16.msra.mxu0 %v2541_v4  ;;  %2337 = vmatprep.subr.bf16.mxu1 %v2542_v5  ;;  %v1496_v23 = vmul.f32 %v1482_v6, %v1470_v15  ;;  %v1498_v43 = vmul.f32 %v1490_v7, %v1472_v17  ;;  %v1495_v2 = vmul.f32 %v1478_v39, %v1469_v38  ;;  %v2203_v7 = vld [vmem:[%s3981_s14] ss:$0 sm:$0xff]  ;;  %s1910_s14 = sshll.u32 %s3727_s16, 4  ;;  %s3770_s14 = int_to_ptr.vmem [resolvable:$true] %s1910_s14 }
 0x28d   : > { %2317 = vmatprep.subr.bf16.mxu0 %v2543_v13  ;;  %v1497_v48 = vmul.f32 %v1486_v42, %v1471_v49  ;;  %v2233_v17 = vld [vmem:[%s3982_s21] ss:$0 sm:$0xff]  ;;  %s3025_s21 = smov [#allocation17]  }
 0x28e   : > { %v1522_v25 = vadd.f32 %v1508_v16, %v1496_v23  ;;  %v1524_v26 = vadd.f32 %v1516_v19, %v1498_v43  ;;  %v1521_v53 = vadd.f32 %v1504_v45, %v1495_v2  ;;  %s2858_s24 = sshll.u32 %s3025_s21, 4  ;;  %s2859_s24 = int_to_ptr.vmem [resolvable:$false] %s2858_s24 }
 0x28f   : > { %2338 = vmatpush3.bf16.msra.mxu1 %v2544_v20  ;;  %v1523_v54 = vadd.f32 %v1512_v52, %v1497_v48  ;;  %s2860_s3 = scalar_lea.vmem %s2859_s24, 1024  ;;  %p2861_p7 = scmp.lt.s32.totalorder %s3724_s5, %s2859_s24 }
 0x290   : > { %2318 = vmatpush3.bf16.msra.mxu0 %v2545_v21  ;;  %2339 = vmatprep.subr.bf16.mxu1 %v2546_v22  ;;  %v1526_v18 = vpack.c.bf16 %v1522_v25, %v1522_v25  ;;  %v1528_v12 = vpack.c.bf16 %v1524_v26, %v1524_v26  ;;  %v1525_v55 = vpack.c.bf16 %v1521_v53, %v1521_v53  ;;  %p2862_p3 = scmp.lt.s32.totalorder %s2860_s3, %s2854_s0 }
 0x291   : > { %2319 = vmatprep.subr.bf16.mxu0 %v2547_v24  ;;  %v1527_v14 = vpack.c.bf16 %v1523_v54, %v1523_v54 }
 0x292   : > { %1824 = vmatprep.mubr.bf16.mxu0 %v1526_v18  ;;  %1864 = vmatprep.mubr.bf16.mxu1 %v1528_v12  ;;  %p2863_p0 = por %p2862_p3, %p2861_p7 }
 0x293   : > { %2340 = vmatpush3.bf16.msra.mxu1 %v2548_v10 }
 0x294   : > { %2320 = vmatpush3.bf16.msra.mxu0 %v2549_v27  ;;  %2341 = vmatprep.subr.bf16.mxu1 %v2550_v28  ;;  %p2864_p5 = pnand %p2863_p0, %p2857_p8 }
 0x295   : > { %2321 = vmatprep.subr.bf16.mxu0 %v2551_v29 }
 0x297   : > { %2342 = vmatpush3.bf16.msra.mxu1 %v2552_v30 }
 0x298   : > { %2322 = vmatpush3.bf16.msra.mxu0 %v2553_v31  ;;  %2343 = vmatprep.subr.bf16.mxu1 %v2554_v32 }
 0x299   : > { %2323 = vmatprep.subr.bf16.mxu0 %v2555_v33 }
 0x29b   : > { %2344 = vmatpush3.bf16.msra.mxu1 %v2556_v51 }
 0x29c   : > { %2324 = vmatpush3.bf16.msra.mxu0 %v2557_v34  ;;  %2345 = vmatprep.subr.bf16.mxu1 %v2558_v35 }
 0x29d   : > { %2325 = vmatprep.subr.bf16.mxu0 %v2559_v37 }
 0x29f   : > { %2346 = vmatpush3.bf16.msra.mxu1 %v2560_v40 }
 0x2a0   : > { %2326 = vmatpush3.bf16.msra.mxu0 %v2561_v41  ;;  %2347 = vmatprep.subr.bf16.mxu1 %v2562_v50 }
 0x2a1   : > { %2327 = vmatprep.subr.bf16.mxu0 %v2563_v44 }
 0x2a3   : > { %2348 = vmatpush3.bf16.msra.mxu1 %v2564_v9 }
 0x2a4   : > { %2328 = vmatpush3.bf16.msra.mxu0 %v2565_v46  ;;  %2349 = vmatprep.subr.bf16.mxu1 %v2566_v47 }
 0x2a7   : > { %1825 = vmatmul.mubr.bf16.vlgmr.msra.gmra.mrb[4].mxu0 %v1525_v55  ;;  %2350 = vmatpush3.bf16.msra.mxu1 %v2567_v11 }
 0x2aa   : > { %1865 = vmatmul.mubr.bf16.vlgmr.msra.gmra.mrb[4].mxu1 %v1527_v14 }
 0x35a   : > { %v2297_v60 = vpop.f32.mrb[0].mxu0 }
 0x35b   : > { %v2298_v56 = vpop.f32.mrb[1].mxu0 }
 0x35c   : > { %v2299_v57 = vadd.f32 %v2298_v56, %v2297_v60  ;;  %v2300_v58 = vpop.f32.mrb[2].mxu0 }
 0x35d   : > { %v2301_v3 = vpop.f32.mrb[3].mxu0  ;;  %v2375_v61 = vpop.f32.mrb[0].mxu1 }
 0x35e   : > { %v2302_v62 = vadd.f32 %v2301_v3, %v2300_v58  ;;  %v1372_v63 = vadd.f32 %v2375_v61, %v2224_v59  ;;  %v1363_v0 = vpop.f32.mrb[1].mxu1  ;;  %v1131_v13 = vadd.f32 %v2299_v57, %v2203_v7 }
 0x35f   : > { %v2376_v1 = vpop.f32.mrb[2].mxu1  ;;  %v1364_v6 = vadd.f32 %v2224_v59, %v1363_v0 }
 0x360   : > { %v1375_v4 = vadd.f32 %v2376_v1, %v2224_v59  ;;  %1382 = vadd.xlane.f32.xlu0 %v1372_v63  ;;  %v1366_v5 = vpop.f32.mrb[3].mxu1  ;;  %v1134_v15 = vadd.f32 %v2302_v62, %v2203_v7  ;;  %v3698_v7 = vld [vmem:[%s3983_s25] ss:$0 sm:$0xff] }
 0x361   : > { %v1367_v8 = vadd.f32 %v2224_v59, %v1366_v5 }
 0x362   : > { %1384 = vadd.xlane.f32.xlu1 %v1375_v4 }
 0x364   : > { %1378 = vadd.xlane.f32.xlu0 %v1364_v6 }
 0x366   : > { %1380 = vadd.xlane.f32.xlu1 %v1367_v8 }
 0x368   : > { %1137 = vadd.xlane.f32.xlu0 %v1131_v13 }
 0x36a   : > { %1139 = vadd.xlane.f32.xlu1 %v1134_v15 }
 0x37a   : > { %v2329_v16 = vpop.f32.mrb[4].mxu0 }
 0x37b   : > { %v2330_v19 = vpop.f32.mrb[5].mxu0 }
 0x37c   : > { %v2331_v20 = vadd.f32 %v2330_v19, %v2329_v16  ;;  %v2332_v21 = vpop.f32.mrb[6].mxu0 }
 0x37d   : > { %v2333_v22 = vpop.f32.mrb[7].mxu0  ;;  %v2351_v23 = vpop.f32.mrb[4].mxu1 }
 0x37e   : > { %v1827_v43 = vadd.f32 %v2331_v20, %v2233_v17  ;;  %v2352_v24 = vpop.f32.mrb[5].mxu1 }
 0x37f   : > { %v2353_v25 = vadd.f32 %v2352_v24, %v2351_v23  ;;  %v2354_v26 = vpop.f32.mrb[6].mxu1 }
 0x380   : > { %v2355_v10 = vpop.f32.mrb[7].mxu1 }
 0x381   : > { %v1867_v18 = vadd.f32 %v2353_v25, %v1827_v43 }
 0x383   : > { %1872 = vadd.xlane.f32.xlu0 %v1867_v18 }
 0x3ed   : > { %v1383_v12 = vpop.xlane.xlu0 %1382 }
 0x3ee   : > { %v1388_v27 = vmul.f32 0.0078125, %v1383_v12 }
 0x3ef   : > { %v1385_v28 = vpop.xlane.xlu1 %1384 }
 0x3f0   : > { %v1392_v29 = vsub.f32 %v1372_v63, %v1388_v27  ;;  %v1389_v30 = vmul.f32 0.0078125, %v1385_v28 }
 0x3f1   : > { %v1379_v31 = vpop.xlane.xlu0 %1378 }
 0x3f2   : > { %v1393_v32 = vsub.f32 %v1375_v4, %v1389_v30  ;;  %v1386_v33 = vmul.f32 0.0078125, %v1379_v31  ;;  %v1396_v51 = vmul.f32 %v1392_v29, %v1392_v29 }
 0x3f3   : > { %v1381_v34 = vpop.xlane.xlu1 %1380 }
 0x3f4   : > { %v1390_v35 = vsub.f32 %v1364_v6, %v1386_v33  ;;  %v1387_v36 = vmul.f32 0.0078125, %v1381_v34  ;;  %1402 = vadd.xlane.f32.xlu1 %v1396_v51  ;;  %v1397_v37 = vmul.f32 %v1393_v32, %v1393_v32 }
 0x3f5   : > { %v1138_v38 = vpop.xlane.xlu0 %1137 }
 0x3f6   : > { %v1391_v39 = vsub.f32 %v1367_v8, %v1387_v36  ;;  %v1142_v40 = vmul.f32 0.0078125, %v1138_v38  ;;  %1404 = vadd.xlane.f32.xlu0 %v1397_v37  ;;  %v1394_v41 = vmul.f32 %v1390_v35, %v1390_v35 }
 0x3f7   : > { %v1140_v50 = vpop.xlane.xlu1 %1139 }
 0x3f8   : > { %v3683_v49 = vsub.f32 %v1131_v13, %v1142_v40  ;;  %v1143_v42 = vmul.f32 0.0078125, %v1140_v50  ;;  %1398 = vadd.xlane.f32.xlu1 %v1394_v41  ;;  %v1395_v44 = vmul.f32 %v1391_v39, %v1391_v39 }
 0x3fa   : > { %v3685_v2 = vsub.f32 %v1134_v15, %v1143_v42  ;;  %1400 = vadd.xlane.f32.xlu0 %v1395_v44  ;;  %v1146_v45 = vmul.f32 %v3683_v49, %v3683_v49  ;;  %v3703_v15 = vld [vmem:[%s3984_s18] ss:$0 sm:$0xff] }
 0x3fc   : > { %1148 = vadd.xlane.f32.xlu1 %v1146_v45  ;;  %v1147_v9 = vmul.f32 %v3685_v2, %v3685_v2 }
 0x3fe   : > { %1150 = vadd.xlane.f32.xlu0 %v1147_v9 }
 0x410   : > { %v1873_v46 = vpop.xlane.xlu0 %1872 }
 0x411   : > { %v1874_v47 = vmul.f32 0.0078125, %v1873_v46 }
 0x413   : > { %v3691_v48 = vsub.f32 %v1867_v18, %v1874_v47 }
 0x415   : > { %v1876_v52 = vmul.f32 %v3691_v48, %v3691_v48 }
 0x417   : > { %1877 = vadd.xlane.f32.xlu1 %v1876_v52 }
 0x481   : > { %v1403_v53 = vpop.xlane.xlu1 %1402 }
 0x482   : > { %v1408_v11 = vmul.f32 0.0078125, %v1403_v53 }
 0x483   : > { %v1405_v54 = vpop.xlane.xlu0 %1404 }
 0x484   : > { %v1412_v55 = vadd.f32 1e-05, %v1408_v11  ;;  %v1409_v14 = vmul.f32 0.0078125, %v1405_v54 }
 0x485   : > { %v1399_v60 = vpop.xlane.xlu1 %1398 }
 0x486   : > { %2582 = vrsqrt.f32 %v1412_v55  ;;  %v1413_v56 = vadd.f32 1e-05, %v1409_v14  ;;  %v1406_v59 = vmul.f32 0.0078125, %v1399_v60 }
 0x487   : > { %v1401_v57 = vpop.xlane.xlu0 %1400 }
 0x488   : > { %2584 = vrsqrt.f32 %v1413_v56  ;;  %v1410_v58 = vadd.f32 1e-05, %v1406_v59  ;;  %v1407_v3 = vmul.f32 0.0078125, %v1401_v57 }
 0x489   : > { %v1149_v61 = vpop.xlane.xlu1 %1148 }
 0x48a   : > { %2586 = vrsqrt.f32 %v1410_v58  ;;  %v1411_v62 = vadd.f32 1e-05, %v1407_v3  ;;  %v1152_v63 = vmul.f32 0.0078125, %v1149_v61 }
 0x48b   : > { %v1151_v0 = vpop.xlane.xlu0 %1150 }
 0x48c   : > { %2588 = vrsqrt.f32 %v1411_v62  ;;  %v1154_v1 = vadd.f32 1e-05, %v1152_v63  ;;  %v1153_v4 = vmul.f32 0.0078125, %v1151_v0 }
 0x48e   : > { %2590 = vrsqrt.f32 %v1154_v1  ;;  %v1155_v5 = vadd.f32 1e-05, %v1153_v4 }
 0x490   : > { %v2583_v6 = vpop.eup %2582  ;;  %2592 = vrsqrt.f32 %v1155_v5 }
 0x491   : > { %v1420_v8 = vmul.f32 %v2583_v6, %v1392_v29 }
 0x492   : > { %v2585_v13 = vpop.eup %2584 }
 0x493   : > { %v1424_v16 = vmul.f32 %v3698_v7, %v1420_v8  ;;  %v1421_v17 = vmul.f32 %v2585_v13, %v1393_v32 }
 0x494   : > { %v2587_v19 = vpop.eup %2586 }
 0x495   : > { %v1428_v20 = vadd.f32 %v3703_v15, %v1424_v16  ;;  %v1425_v21 = vmul.f32 %v3698_v7, %v1421_v17  ;;  %v1418_v22 = vmul.f32 %v2587_v19, %v1390_v35 }
 0x496   : > { %v2589_v23 = vpop.eup %2588 }
 0x497   : > { %1432 = vst [vmem:[%s871_s9 + $0x10] sm:$0xff] %v1428_v20  ;;  %v1429_v43 = vadd.f32 %v3703_v15, %v1425_v21  ;;  %v1422_v24 = vmul.f32 %v3698_v7, %v1418_v22  ;;  %v1419_v25 = vmul.f32 %v2589_v23, %v1391_v39 }
 0x498   : > { %v2591_v26 = vpop.eup %2590 }
 0x499   : > { %1433 = vst [vmem:[%s871_s9 + $0x18] sm:$0xff] %v1429_v43  ;;  %v1426_v10 = vadd.f32 %v3703_v15, %v1422_v24  ;;  %v1423_v18 = vmul.f32 %v3698_v7, %v1419_v25  ;;  %v1158_v12 = vmul.f32 %v2591_v26, %v3683_v49 }
 0x49a   : > { %v2593_v27 = vpop.eup %2592 }
 0x49b   : > { %1430 = vst [vmem:[%s871_s9] sm:$0xff] %v1426_v10  ;;  %v1427_v28 = vadd.f32 %v3703_v15, %v1423_v18  ;;  %v1166_v29 = vmul.f32 %v3698_v7, %v1158_v12  ;;  %v1159_v30 = vmul.f32 %v2593_v27, %v3685_v2 }
 0x49d   : > { %1431 = vst [vmem:[%s871_s9 + $0x8] sm:$0xff] %v1427_v28  ;;  %v1174_v31 = vadd.f32 %v3703_v15, %v1166_v29  ;;  %v1167_v32 = vmul.f32 %v3698_v7, %v1159_v30 }
 0x49e   : > { %2867 = shalt.err (!%p2864_p5)
}
 0x49f   : > { %s2868_s25 = scalar_lea.hbm %s3722_s22, 512  ;;  %s2872_s18 = scalar_lea.hbm %s3986_s26, 1024 }
 0x4a0   : > { %p2869_p9 = scmp.ne.s32.totalorder %s3722_s22, %s2868_s25  ;;  %p2873_p11 = scmp.lt.u32.totalorder %s3722_s22, %s3986_s26 }
 0x4a1   : > { %p2874_p12 = scmp.lt.u32.totalorder %s2872_s18, %s2868_s25  ;;  %p2876_p4 = scmp.lt.u32.totalorder %s2868_s25, %s3722_s22 }
 0x4a2   : > { %p2870_p13 = pnand %p2869_p9, %p3987_p10 }
 0x4a3   : > { %p2875_p2 = por %p2874_p12, %p2873_p11 }
 0x4a4   : > { %p2871_p1 = pneg %p2870_p13 }
 0x4a5   : > { %p2877_p6 = por %p2876_p4, %p2875_p2 }
 0x4a7   : > { %p2878_p8 = pnand %p2877_p6, %p2871_p1 }
 0x4a9   : > { %2881 = shalt.err (!%p2878_p8)
}
 0x4aa   : > { %s3026_s27 = smov 128   ;;  %s3027_s6 = smov 8   ;;  %v1175_v33 = vadd.f32 %v3703_v15, %v1167_v32  ;;  %1176 = vst [vmem:[%s3727_s16] sm:$0xff] %v1174_v31 }
 0x4ab   : > { %2408 = dma.vmem_to_hbm [thread:$0]  (%p3987_p10), %s3724_s5, 512, %s3722_s22, %s1892_s17, %s3026_s27, %s3026_s27, %s3027_s6  }
 0x4ac   : > { %s3988_s21 = sld [smem:[#allocation53_spill]]  ;;  %1177 = vst [vmem:[%s3727_s16 + $0x8] sm:$0xff] %v1175_v33  ;;  %s1887_s3 = scalar_lea.sflag [#allocation4], %s3497_s19 }
 0x4ad   : > { %s2882_s25 = scalar_lea.vmem %s3770_s14, 256  ;;  %s3028_s5 = smov [#allocation16]  }
 0x4ae   : > { %p2883_p7 = scmp.ne.s32.totalorder %s3770_s14, %s2882_s25  ;;  %s2886_s22 = sshll.u32 %s3028_s5, 4  ;;  %s2887_s22 = int_to_ptr.vmem [resolvable:$false] %s2886_s22 }
 0x4af   : > { %s2888_s13 = scalar_lea.vmem %s2887_s22, 512  ;;  %p2889_p5 = scmp.lt.s32.totalorder %s3770_s14, %s2887_s22 }
 0x4b0   : > { %p2884_p3 = pnand %p2883_p7, %p3987_p10  ;;  %p2890_p9 = scmp.lt.s32.totalorder %s2888_s13, %s2882_s25 }
 0x4b2   : > { %s3766_s24 = scalar_lea.hbm %s3988_s21, %s2279_s2  ;;  %p2885_p0 = pneg %p2884_p3 }
 0x4b3   : > { %p2891_p13 = por %p2890_p9, %p2889_p5 }
 0x4b5   : > { %p2892_p1 = pnand %p2891_p13, %p2885_p0 }
 0x4b7   : > { %2895 = shalt.err (!%p2892_p1)
}
 0x4b8   : > { %s2896_s2 = scalar_lea.hbm %s3766_s24, 256  ;;  %s2900_s18 = scalar_lea.hbm %s3988_s21, 512 }
 0x4b9   : > { %p2897_p11 = scmp.ne.s32.totalorder %s3766_s24, %s2896_s2  ;;  %p2901_p4 = scmp.lt.u32.totalorder %s3766_s24, %s3988_s21 }
 0x4ba   : > { %p2902_p6 = scmp.lt.u32.totalorder %s2900_s18, %s2896_s2  ;;  %p2904_p7 = scmp.lt.u32.totalorder %s2896_s2, %s3766_s24 }
 0x4bb   : > { %p2898_p12 = pnand %p2897_p11, %p3987_p10 }
 0x4bc   : > { %p2903_p8 = por %p2902_p6, %p2901_p4 }
 0x4bd   : > { %p2899_p2 = pneg %p2898_p12 }
 0x4be   : > { %p2905_p3 = por %p2904_p7, %p2903_p8 }
 0x4c0   : > { %p2906_p0 = pnand %p2905_p3, %p2899_p2 }
 0x4c2   : > { %2909 = shalt.err (!%p2906_p0)
}
 0x4c3   : > { %2407 = dma.vmem_to_hbm [thread:$0]  (%p3987_p10), %s3770_s14, 256, %s3766_s24, %s1887_s3, %s3026_s27, %s3026_s27, %s3027_s6   ;;  %v1878_v51 = vpop.xlane.xlu1 %1877 }
 0x4c4   : > { %v1879_v34 = vmul.f32 0.0078125, %v1878_v51  ;;  %s2202_s11 = sshll.u32 %s3497_s19, 3  ;;  %s2273_s0 = sshll.u32 %s3166_s23, 7 }
 0x4c5   : > { %s878_s25 = scalar_lea.vmem [#allocation19], %s2202_s11  ;;  %s3989_s2 = sld [smem:[#allocation55_spill]] }
 0x4c6   : > { %v1880_v35 = vadd.f32 1e-05, %v1879_v34  ;;  %s1942_s5 = sshll.u32 %s878_s25, 4  ;;  %s3029_s19 = smov [#allocation19]   ;;  %s1943_s5 = int_to_ptr.vmem [resolvable:$true] %s1942_s5 }
 0x4c7   : > { %s2910_s27 = scalar_lea.vmem %s1943_s5, 128  ;;  %s2914_s23 = sshll.u32 %s3029_s19, 4  ;;  %s2915_s23 = int_to_ptr.vmem [resolvable:$false] %s2914_s23 }
 0x4c8   : > { %2594 = vrsqrt.f32 %v1880_v35  ;;  %p2911_p5 = scmp.ne.s32.totalorder %s1943_s5, %s2910_s27  ;;  %s2916_s6 = scalar_lea.vmem %s2915_s23, 256 }
 0x4c9   : > { %p2917_p1 = scmp.lt.s32.totalorder %s1943_s5, %s2915_s23  ;;  %p2918_p11 = scmp.lt.s32.totalorder %s2916_s6, %s2910_s27 }
 0x4ca   : > { %p2912_p9 = pnand %p2911_p5, %p3987_p10 }
 0x4cb   : > { %s3808_s14 = scalar_lea.hbm %s3989_s2, %s2273_s0  ;;  %p2919_p12 = por %p2918_p11, %p2917_p1 }
 0x4cc   : > { %p2913_p13 = pneg %p2912_p9 }
 0x4ce   : > { %p2920_p2 = pnand %p2919_p12, %p2913_p13 }
 0x4d2   : > { %v2595_v36 = vpop.eup %2594 }
 0x4d3   : > { %v1882_v37 = vmul.f32 %v2595_v36, %v3691_v48 }
 0x4d5   : > { %v1883_v38 = vmul.f32 %v3698_v7, %v1882_v37 }
 0x4d7   : > { %v1884_v39 = vadd.f32 %v3703_v15, %v1883_v38 }
 0x4d9   : > { %1885 = vst [vmem:[%s878_s25] sm:$0xff] %v1884_v39 }
 0x4da   : > { %2923 = shalt.err (!%p2920_p2)
}
 0x4db   : > { %s2924_s24 = scalar_lea.hbm %s3808_s14, 128  ;;  %s2928_s15 = scalar_lea.hbm %s3989_s2, 256 }
 0x4dc   : > { %p2925_p4 = scmp.ne.s32.totalorder %s3808_s14, %s2924_s24  ;;  %p2929_p7 = scmp.lt.u32.totalorder %s3808_s14, %s3989_s2 }
 0x4dd   : > { %p2930_p3 = scmp.lt.u32.totalorder %s2928_s15, %s2924_s24  ;;  %p2932_p5 = scmp.lt.u32.totalorder %s2924_s24, %s3808_s14 }
 0x4de   : > { %p2926_p6 = pnand %p2925_p4, %p3987_p10 }
 0x4df   : > { %p2931_p0 = por %p2930_p3, %p2929_p7 }
 0x4e0   : > { %p2927_p8 = pneg %p2926_p6 }
 0x4e1   : > { %p2933_p9 = por %p2932_p5, %p2931_p0 }
 0x4e3   : > { %p2934_p13 = pnand %p2933_p9, %p2927_p8 }
 0x4e5   : > { %2937 = shalt.err (!%p2934_p13)
}
 0x4e6   : > { %2409 = dma.vmem_to_hbm [thread:$0]  (%p3987_p10), %s1943_s5, 128, %s3808_s14, %s1892_s17  }
 0x4e7 PF: > { %s3990_s9 = sld [smem:[#allocation30_spill]]  ;;  %s3991_s11 = sld [smem:[#allocation35_spill]] }
 0x4e8   : > { %p3993_p11 = scmp.ge.s32.totalorder %s3008_s30, 2 }
 0x4ed   : > { %s1954_s0 = sand.u32 1, %s3990_s9   ;;  %p3992_p1 = scmp.ne.s32.totalorder %s3991_s11, 0 }
 0x4ee   : > { %s1955_s25 = scalar_lea.sflag [#allocation4], %s1954_s0 }
 0x4ef   : > { %p2443_p12 = pnand %p3993_p11, %p3992_p1 }
 0x4f1   : > { %2987 = dma.done.wait (!%p2443_p12), %s1955_s25, 256  }
 0x4f2   : > { %2989 = vsyncadd (!%p2443_p12), %s1955_s25, 4294967040  ;;  %s3994_s22 = sadd.s32 4294967294, %s3008_s30  }
 0x4f3   : > { %s1963_s13 = sand.u32 1, %s3994_s22  }
 0x4f4   : > { %s1964_s27 = scalar_lea.sflag [#allocation18], %s1963_s13 }
 0x4f5   : > { %2991 = dma.done.wait (!%p2443_p12), %s1964_s27, 640  }
 0x4f6   : > { %2993 = vsyncadd (!%p2443_p12), %s1964_s27, 4294966656  ;;  %s3995_s30 = sld [smem:[#allocation32_spill]]  ;;  %s3996_s29 = sld [smem:[#allocation31_spill]] }
 0x4f7   : > { %s3997_s8 = sld [smem:[#allocation33_spill]]  ;;  %s3998_s3 = smov %s3000_s28 }
 0x4fc   : > { %p44_p10 = scmp.ge.s32.totalorder %s3995_s30, 4   ;;  %s3999_s28 = smov %s3996_s29 }
 0x4fd   : > { %s4000_s29 = smov %s3997_s8 }
 0x4fe   :  { %46 = sbr.rel (!%p44_p10) target bundleno = 32 (0x20), region = 225 }
 0x505   :  { %1978 = vsyncpa [#allocation3], 1 }
 0x506   :  { %1980 = vsyncpa [#allocation3 + $0x1], 1 }
 0x507   :  { %1981 = vsyncpa [#allocation6], 1 }
 0x508   :  { %1982 = vsyncpa [#allocation9], 1 }
 0x509   :  { %1983 = vsyncpa [#allocation14], 1 }
 0x50a   :  { %1985 = vsyncpa [#allocation14 + $0x1], 1 }
 0x50b   :  { %1986 = vsyncpa [#allocation4], 1 }
 0x50c   :  { %1988 = vsyncpa [#allocation4 + $0x1], 1 }
 0x50d   :  { %1989 = vsyncpa [#allocation18], 1 }
 0x50e   :  { %1991 = vsyncpa [#allocation18 + $0x1], 1 }

</bundles_post_ra>
